<compile_context>
chip_gen: v7x
topology: tpu7x:2x2x1
jax: 0.10.0
libtpu: 0.0.40
codegen_flags: <defaults>
</compile_context>

<pallas_src>
import jax
import jax.numpy as jnp
from jax.experimental import pallas as pl
from jax.experimental.pallas import tpu as pltpu

BN_EPS = 1e-5
LRELU_SLOPE = 0.1
LANE = 128
SUBLANE = 8


def _round_up(n, m):
    return ((n + m - 1) // m) * m


# ------------------------------ fused kernel ------------------------------- #

def _make_fused_kernel(n_blocks):
    """Kernel over refs: x, (w, b) * n_blocks, w_out, b_out, o."""

    def kernel(*refs):
        x_ref = refs[0]
        w_out_ref = refs[1 + 2 * n_blocks]
        b_out_ref = refs[2 + 2 * n_blocks]
        o_ref = refs[3 + 2 * n_blocks]

        h = x_ref[...]                                       # f32 activations
        for i in range(n_blocks):                            # statically unrolled
            w_ref = refs[1 + 2 * i]
            b_ref = refs[2 + 2 * i]
            # bf16 operands -> MXU-native; f32 accumulation.
            y = jnp.dot(h.astype(jnp.bfloat16), w_ref[...],
                        preferred_element_type=jnp.float32) + b_ref[...]
            h = jnp.maximum(y, LRELU_SLOPE * y)              # LeakyReLU(0.1)

        o_ref[...] = jnp.dot(h.astype(jnp.bfloat16), w_out_ref[...],
                             preferred_element_type=jnp.float32) + b_out_ref[...]

    return kernel


# ------------------------------ pallas wrapper ------------------------------ #

def _vmem_cap_bytes():
    try:
        return int(pltpu.get_tpu_info().vmem_capacity_bytes)
    except Exception:
        return 64 << 20      # conservative default (v7x per-TC physical VMEM)


def _fused_pallas(fused, x, row_tile, single_buffer_params):
    B, din = x.shape
    blocks = fused["blocks"]                 # list of (w_bf16, b_f32), padded
    w_out, b_out = fused["w_out"], fused["b_out"]
    din_pad = blocks[0][0].shape[0]
    out_pad = w_out.shape[1]                 # lane-dense (multiple of 128)

    # batch tile: multiple of 8 sublanes, capped by (padded) batch size,
    # and split into >=2 tiles when possible so megacore gets work.
    row_tile = max(SUBLANE, (row_tile // SUBLANE) * SUBLANE)
    b_up = _round_up(B, SUBLANE)
    row_tile = min(row_tile, b_up)
    if b_up >= 2 * SUBLANE:
        row_tile = min(row_tile, _round_up((b_up + 1) // 2, SUBLANE))
    b_pad = _round_up(B, row_tile)

    if (b_pad != B) or (din_pad != din):
        x = jnp.pad(x, ((0, b_pad - B), (0, din_pad - din)))

    grid = (b_pad // row_tile,)

    def param_spec(shape):
        if single_buffer_params:
            # constant block index -> second pipeline buffer is pure waste
            return pl.BlockSpec(shape, lambda i: (0, 0),
                                pipeline_mode=pl.Buffered(1))
        return pl.BlockSpec(shape, lambda i: (0, 0))

    # input specs: activations stream over the batch grid; params stay resident
    in_specs = [pl.BlockSpec((row_tile, din_pad), lambda i: (i, 0))]
    flat_inputs = [x]
    for (w, b) in blocks:
        in_specs += [param_spec(w.shape), param_spec(b.shape)]
        flat_inputs += [w, b]
    in_specs += [param_spec(w_out.shape), param_spec(b_out.shape)]
    flat_inputs += [w_out, b_out]

    out_spec = pl.BlockSpec((row_tile, out_pad), lambda i: (i, 0))

    # VMEM budget: resident params (+ x / out double buffers) + unrolled
    # activation temporaries + headroom, capped at ~3/4 of physical VMEM.
    param_bytes = sum(int(p.size) * p.dtype.itemsize for p in flat_inputs[1:])
    if not single_buffer_params:
        param_bytes *= 2
    act_bytes = 2 * (row_tile * din_pad + row_tile * out_pad) * 4
    inter_bytes = sum(row_tile * w.shape[1] * 4 for (w, _) in blocks)
    need = param_bytes + act_bytes + inter_bytes + (8 << 20)
    ceiling = (_vmem_cap_bytes() * 3) // 4
    vmem_limit = int(min(ceiling, max(32 << 20, need)))

    y = pl.pallas_call(
        _make_fused_kernel(len(blocks)),
        out_shape=jax.ShapeDtypeStruct((b_pad, out_pad), jnp.float32),
        grid_spec=pltpu.PrefetchScalarGridSpec(
            num_scalar_prefetch=0,
            grid=grid,
            in_specs=in_specs,
            out_specs=out_spec,
        ),
        compiler_params=pltpu.CompilerParams(
            dimension_semantics=("parallel",),
            vmem_limit_bytes=vmem_limit,
        ),
    )(*flat_inputs)
    return y


def forward(fused, x, row_tile=512):
    """Fused forward pass; returns [batch, output_dim]."""
    B = x.shape[0]
    try:
        y = _fused_pallas(fused, x, row_tile, single_buffer_params=True)
    except Exception:
        # TODO(synk): pl.Buffered(1) not supported by this jax version; fall
        # back to default double-buffered resident params.
        y = _fused_pallas(fused, x, row_tile, single_buffer_params=False)
    return y[:B, :fused["output_dim"]]


# ------------------------- parameter initialization ------------------------- #

def kaiming_normal(key, fan_in, fan_out, a=LRELU_SLOPE):
    """kaiming_normal_(mode='fan_in', nonlinearity='leaky_relu'), pre-transposed [in, out]."""
    gain = jnp.sqrt(2.0 / (1.0 + a * a))
    std = gain / jnp.sqrt(float(fan_in))
    return jax.random.normal(key, (fan_in, fan_out), jnp.float32) * std


def make_bn_params(dim):
    # gamma=1, beta=0, running_mean=0, running_var=1 (fresh BatchNorm1d)
    return dict(
        gamma=jnp.ones((1, dim), jnp.float32),
        beta=jnp.zeros((1, dim), jnp.float32),
        mean=jnp.zeros((1, dim), jnp.float32),
        var=jnp.ones((1, dim), jnp.float32),
    )


def init_params(key, input_dim, output_dim, hidden_dims):
    params = {"input_bn": make_bn_params(input_dim)}

    dims = [input_dim] + list(hidden_dims)
    blocks = []
    for i in range(len(hidden_dims)):
        key, wk = jax.random.split(key)
        blocks.append(dict(
            w=kaiming_normal(wk, dims[i], dims[i + 1]),
            b=jnp.zeros((1, dims[i + 1]), jnp.float32),
            bn=make_bn_params(dims[i + 1]),
        ))
    params["blocks"] = blocks

    key, wk = jax.random.split(key)
    params["pre_output"] = dict(
        w=kaiming_normal(wk, hidden_dims[-1], hidden_dims[-1]),
        b=jnp.zeros((1, hidden_dims[-1]), jnp.float32),
        bn=make_bn_params(hidden_dims[-1]),
    )

    key, wk = jax.random.split(key)
    params["out"] = dict(
        w=kaiming_normal(wk, hidden_dims[-1], output_dim),
        b=jnp.zeros((1, output_dim), jnp.float32),
    )
    return params


# -------------------- host-side folding / preprocessing --------------------- #

def preprocess_params(params, output_dim):
    """Fold input BN into Linear0, fold each post-act BN into the next Linear,
    zero-pad every dim to lane multiples (128), cast weights to bf16."""
    ibn = params["input_bn"]
    s_in = ibn["gamma"] * jax.lax.rsqrt(ibn["var"] + BN_EPS)      # (1, Din)
    t_in = ibn["beta"] - ibn["mean"] * s_in                       # (1, Din)

    raw_blocks = list(params["blocks"]) + [params["pre_output"]]

    # 1) fold input BN into the first Linear (exact in eval mode):
    #    input_bn(x) @ W + b == x @ (s_in[:,None]*W) + (b + t_in @ W)
    ws, bs = [], []
    for idx, blk in enumerate(raw_blocks):
        w, b = blk["w"], blk["b"]
        if idx == 0:
            b = b + t_in @ w
            w = s_in.reshape(-1, 1) * w
        ws.append(w)
        bs.append(b)
    w_out, b_out = params["out"]["w"], params["out"]["b"]

    # 2) fold each block's post-activation BN into the NEXT Linear:
    #    (y*scale + shift) @ W + b == y @ (scale[:,None]*W) + (shift @ W + b)
    for idx, blk in enumerate(raw_blocks):
        bn = blk["bn"]
        scale = bn["gamma"] * jax.lax.rsqrt(bn["var"] + BN_EPS)   # (1, N)
        shift = bn["beta"] - bn["mean"] * scale                   # (1, N)
        if idx + 1 < len(raw_blocks):
            bs[idx + 1] = bs[idx + 1] + shift @ ws[idx + 1]
            ws[idx + 1] = scale.reshape(-1, 1) * ws[idx + 1]
        else:
            b_out = b_out + shift @ w_out
            w_out = scale.reshape(-1, 1) * w_out

    # 3) zero-pad every feature dim to a multiple of 128 (lane-dense chain),
    #    then cast weights to bf16 (biases stay f32).
    in_pad = _round_up(ws[0].shape[0], LANE)
    blocks = []
    for w, b in zip(ws, bs):
        n = w.shape[1]
        n_pad = _round_up(n, LANE)
        w = jnp.pad(w, ((0, in_pad - w.shape[0]), (0, n_pad - n)))
        b = jnp.pad(b, ((0, 0), (0, n_pad - n)))
        blocks.append((w.astype(jnp.bfloat16), b.astype(jnp.float32)))
        in_pad = n_pad

    out_pad = _round_up(output_dim, LANE)
    w_out = jnp.pad(w_out, ((0, in_pad - w_out.shape[0]), (0, out_pad - output_dim)))
    b_out = jnp.pad(b_out, ((0, 0), (0, out_pad - output_dim)))

    return dict(blocks=blocks,
                w_out=w_out.astype(jnp.bfloat16),
                b_out=b_out.astype(jnp.float32),
                output_dim=output_dim)


# ------------------------- pure-JAX reference checks ------------------------ #

def forward_ref(params, x):
    """Full-precision (f32) eval-mode reference matching the PyTorch module."""
    def bn(h, p):
        return (h - p["mean"]) * jax.lax.rsqrt(p["var"] + BN_EPS) * p["gamma"] + p["beta"]

    def lrelu(h):
        return jnp.where(h >= 0, h, LRELU_SLOPE * h)

    h = bn(x, params["input_bn"])
    for blk in params["blocks"]:
        h = bn(lrelu(h @ blk["w"] + blk["b"]), blk["bn"])
    po = params["pre_output"]
    h = bn(lrelu(h @ po["w"] + po["b"]), po["bn"])
    out = params["out"]
    return h @ out["w"] + out["b"]


def forward_ref_folded(fused, x):
    """Same math as the kernel (folded params, bf16 matmuls) in plain JAX."""
    din_pad = fused["blocks"][0][0].shape[0]
    h = jnp.pad(x, ((0, 0), (0, din_pad - x.shape[1])))
    for (w, b) in fused["blocks"]:
        y = jnp.dot(h.astype(jnp.bfloat16), w,
                    preferred_element_type=jnp.float32) + b
        h = jnp.maximum(y, LRELU_SLOPE * y)
    y = jnp.dot(h.astype(jnp.bfloat16), fused["w_out"],
                preferred_element_type=jnp.float32) + fused["b_out"]
    return y[:, :fused["output_dim"]]


# ---------------------------------- main ----------------------------------- #

if __name__ == "__main__":
    key = jax.random.PRNGKey(0)

    batch = 8
    input_dim = 32
    output_dim = 4
    hidden_dims = [64, 64, 32, 32]   # small stand-in for default [768,512,256,128]

    key, pkey, xkey = jax.random.split(key, 3)
    params = init_params(pkey, input_dim, output_dim, hidden_dims)
    x = jax.random.normal(xkey, (batch, input_dim), jnp.float32)

    fused = preprocess_params(params, output_dim)
    y = jax.block_until_ready(forward(fused, x))
    assert y.shape == (batch, output_dim)

    # tight check vs identical bf16 folded math in plain JAX
    y_folded = forward_ref_folded(fused, x)
    assert jnp.allclose(y, y_folded, atol=2e-3, rtol=2e-3), "mismatch vs folded bf16 reference"

    # loose check vs the full f32 eval-mode reference (bf16 weights -> expected drift)
    y_f32 = forward_ref(params, x)
    assert jnp.allclose(y, y_f32, atol=5e-2, rtol=5e-2), "mismatch vs f32 reference"

    print("KERNEL_OK")
</pallas_src>

<mosaic_0001>
module attributes {stable_mosaic.version = 11 : i64} {
  func.func @kernel(%arg0: i32, %arg1: memref<8x128xf32, #tpu.memory_space<vmem>>, %arg2: memref<128x128xbf16, #tpu.memory_space<vmem>>, %arg3: memref<1x128xf32, #tpu.memory_space<vmem>>, %arg4: memref<128x128xbf16, #tpu.memory_space<vmem>>, %arg5: memref<1x128xf32, #tpu.memory_space<vmem>>, %arg6: memref<128x128xbf16, #tpu.memory_space<vmem>>, %arg7: memref<1x128xf32, #tpu.memory_space<vmem>>, %arg8: memref<128x128xbf16, #tpu.memory_space<vmem>>, %arg9: memref<1x128xf32, #tpu.memory_space<vmem>>, %arg10: memref<128x128xbf16, #tpu.memory_space<vmem>>, %arg11: memref<1x128xf32, #tpu.memory_space<vmem>>, %arg12: memref<128x128xbf16, #tpu.memory_space<vmem>>, %arg13: memref<1x128xf32, #tpu.memory_space<vmem>>, %arg14: memref<8x128xf32, #tpu.memory_space<vmem>>) attributes {dimension_semantics = [#tpu.dimension_semantics<parallel>], iteration_bounds = array<i64: 1>, scalar_prefetch = 0 : i64, scratch_operands = 0 : i64, tpu.core_type = #tpu.core_type<tc>, window_params = [{transform_indices = @transform_0, window_bounds = array<i64: 8, 128>}, {pipeline_mode = #tpu.pipeline_mode<synchronous>, transform_indices = @transform_1, window_bounds = array<i64: 128, 128>}, {pipeline_mode = #tpu.pipeline_mode<synchronous>, transform_indices = @transform_2, window_bounds = array<i64: 1, 128>}, {pipeline_mode = #tpu.pipeline_mode<synchronous>, transform_indices = @transform_3, window_bounds = array<i64: 128, 128>}, {pipeline_mode = #tpu.pipeline_mode<synchronous>, transform_indices = @transform_4, window_bounds = array<i64: 1, 128>}, {pipeline_mode = #tpu.pipeline_mode<synchronous>, transform_indices = @transform_5, window_bounds = array<i64: 128, 128>}, {pipeline_mode = #tpu.pipeline_mode<synchronous>, transform_indices = @transform_6, window_bounds = array<i64: 1, 128>}, {pipeline_mode = #tpu.pipeline_mode<synchronous>, transform_indices = @transform_7, window_bounds = array<i64: 128, 128>}, {pipeline_mode = #tpu.pipeline_mode<synchronous>, transform_indices = @transform_8, window_bounds = array<i64: 1, 128>}, {pipeline_mode = #tpu.pipeline_mode<synchronous>, transform_indices = @transform_9, window_bounds = array<i64: 128, 128>}, {pipeline_mode = #tpu.pipeline_mode<synchronous>, transform_indices = @transform_10, window_bounds = array<i64: 1, 128>}, {pipeline_mode = #tpu.pipeline_mode<synchronous>, transform_indices = @transform_11, window_bounds = array<i64: 128, 128>}, {pipeline_mode = #tpu.pipeline_mode<synchronous>, transform_indices = @transform_12, window_bounds = array<i64: 1, 128>}, {transform_indices = @transform_13, window_bounds = array<i64: 8, 128>}]} {
    %c0 = arith.constant 0 : index
    %c0_0 = arith.constant 0 : index
    %0 = vector.load %arg1[%c0, %c0_0] : memref<8x128xf32, #tpu.memory_space<vmem>>, vector<8x128xf32>
    %1 = arith.truncf %0 : vector<8x128xf32> to vector<8x128xbf16>
    %c0_1 = arith.constant 0 : index
    %c0_2 = arith.constant 0 : index
    %2 = vector.load %arg2[%c0_1, %c0_2] : memref<128x128xbf16, #tpu.memory_space<vmem>>, vector<128x128xbf16>
    %cst = arith.constant dense<0.000000e+00> : vector<8x128xf32>
    %3 = tpu.matmul %1, %2, %cst {dimension_numbers = #tpu.dot_dimension_numbers<[1], [0], [0], [1], [0, 0, 1, 1], [], []>} : vector<8x128xbf16>, vector<128x128xbf16>, vector<8x128xf32> -> vector<8x128xf32>
    %c0_3 = arith.constant 0 : index
    %c0_4 = arith.constant 0 : index
    %4 = vector.load %arg3[%c0_3, %c0_4] : memref<1x128xf32, #tpu.memory_space<vmem>>, vector<1x128xf32>
    %5 = vector.broadcast %4 : vector<1x128xf32> to vector<8x128xf32>
    %6 = arith.addf %3, %5 : vector<8x128xf32>
    %cst_5 = arith.constant 1.000000e-01 : f32
    %7 = vector.broadcast %cst_5 : f32 to vector<8x128xf32>
    %8 = arith.mulf %7, %6 : vector<8x128xf32>
    %9 = arith.maximumf %6, %8 : vector<8x128xf32>
    %10 = arith.truncf %9 : vector<8x128xf32> to vector<8x128xbf16>
    %c0_6 = arith.constant 0 : index
    %c0_7 = arith.constant 0 : index
    %11 = vector.load %arg4[%c0_6, %c0_7] : memref<128x128xbf16, #tpu.memory_space<vmem>>, vector<128x128xbf16>
    %cst_8 = arith.constant dense<0.000000e+00> : vector<8x128xf32>
    %12 = tpu.matmul %10, %11, %cst_8 {dimension_numbers = #tpu.dot_dimension_numbers<[1], [0], [0], [1], [0, 0, 1, 1], [], []>} : vector<8x128xbf16>, vector<128x128xbf16>, vector<8x128xf32> -> vector<8x128xf32>
    %c0_9 = arith.constant 0 : index
    %c0_10 = arith.constant 0 : index
    %13 = vector.load %arg5[%c0_9, %c0_10] : memref<1x128xf32, #tpu.memory_space<vmem>>, vector<1x128xf32>
    %14 = vector.broadcast %13 : vector<1x128xf32> to vector<8x128xf32>
    %15 = arith.addf %12, %14 : vector<8x128xf32>
    %cst_11 = arith.constant 1.000000e-01 : f32
    %16 = vector.broadcast %cst_11 : f32 to vector<8x128xf32>
    %17 = arith.mulf %16, %15 : vector<8x128xf32>
    %18 = arith.maximumf %15, %17 : vector<8x128xf32>
    %19 = arith.truncf %18 : vector<8x128xf32> to vector<8x128xbf16>
    %c0_12 = arith.constant 0 : index
    %c0_13 = arith.constant 0 : index
    %20 = vector.load %arg6[%c0_12, %c0_13] : memref<128x128xbf16, #tpu.memory_space<vmem>>, vector<128x128xbf16>
    %cst_14 = arith.constant dense<0.000000e+00> : vector<8x128xf32>
    %21 = tpu.matmul %19, %20, %cst_14 {dimension_numbers = #tpu.dot_dimension_numbers<[1], [0], [0], [1], [0, 0, 1, 1], [], []>} : vector<8x128xbf16>, vector<128x128xbf16>, vector<8x128xf32> -> vector<8x128xf32>
    %c0_15 = arith.constant 0 : index
    %c0_16 = arith.constant 0 : index
    %22 = vector.load %arg7[%c0_15, %c0_16] : memref<1x128xf32, #tpu.memory_space<vmem>>, vector<1x128xf32>
    %23 = vector.broadcast %22 : vector<1x128xf32> to vector<8x128xf32>
    %24 = arith.addf %21, %23 : vector<8x128xf32>
    %cst_17 = arith.constant 1.000000e-01 : f32
    %25 = vector.broadcast %cst_17 : f32 to vector<8x128xf32>
    %26 = arith.mulf %25, %24 : vector<8x128xf32>
    %27 = arith.maximumf %24, %26 : vector<8x128xf32>
    %28 = arith.truncf %27 : vector<8x128xf32> to vector<8x128xbf16>
    %c0_18 = arith.constant 0 : index
    %c0_19 = arith.constant 0 : index
    %29 = vector.load %arg8[%c0_18, %c0_19] : memref<128x128xbf16, #tpu.memory_space<vmem>>, vector<128x128xbf16>
    %cst_20 = arith.constant dense<0.000000e+00> : vector<8x128xf32>
    %30 = tpu.matmul %28, %29, %cst_20 {dimension_numbers = #tpu.dot_dimension_numbers<[1], [0], [0], [1], [0, 0, 1, 1], [], []>} : vector<8x128xbf16>, vector<128x128xbf16>, vector<8x128xf32> -> vector<8x128xf32>
    %c0_21 = arith.constant 0 : index
    %c0_22 = arith.constant 0 : index
    %31 = vector.load %arg9[%c0_21, %c0_22] : memref<1x128xf32, #tpu.memory_space<vmem>>, vector<1x128xf32>
    %32 = vector.broadcast %31 : vector<1x128xf32> to vector<8x128xf32>
    %33 = arith.addf %30, %32 : vector<8x128xf32>
    %cst_23 = arith.constant 1.000000e-01 : f32
    %34 = vector.broadcast %cst_23 : f32 to vector<8x128xf32>
    %35 = arith.mulf %34, %33 : vector<8x128xf32>
    %36 = arith.maximumf %33, %35 : vector<8x128xf32>
    %37 = arith.truncf %36 : vector<8x128xf32> to vector<8x128xbf16>
    %c0_24 = arith.constant 0 : index
    %c0_25 = arith.constant 0 : index
    %38 = vector.load %arg10[%c0_24, %c0_25] : memref<128x128xbf16, #tpu.memory_space<vmem>>, vector<128x128xbf16>
    %cst_26 = arith.constant dense<0.000000e+00> : vector<8x128xf32>
    %39 = tpu.matmul %37, %38, %cst_26 {dimension_numbers = #tpu.dot_dimension_numbers<[1], [0], [0], [1], [0, 0, 1, 1], [], []>} : vector<8x128xbf16>, vector<128x128xbf16>, vector<8x128xf32> -> vector<8x128xf32>
    %c0_27 = arith.constant 0 : index
    %c0_28 = arith.constant 0 : index
    %40 = vector.load %arg11[%c0_27, %c0_28] : memref<1x128xf32, #tpu.memory_space<vmem>>, vector<1x128xf32>
    %41 = vector.broadcast %40 : vector<1x128xf32> to vector<8x128xf32>
    %42 = arith.addf %39, %41 : vector<8x128xf32>
    %cst_29 = arith.constant 1.000000e-01 : f32
    %43 = vector.broadcast %cst_29 : f32 to vector<8x128xf32>
    %44 = arith.mulf %43, %42 : vector<8x128xf32>
    %45 = arith.maximumf %42, %44 : vector<8x128xf32>
    %46 = arith.truncf %45 : vector<8x128xf32> to vector<8x128xbf16>
    %c0_30 = arith.constant 0 : index
    %c0_31 = arith.constant 0 : index
    %47 = vector.load %arg12[%c0_30, %c0_31] : memref<128x128xbf16, #tpu.memory_space<vmem>>, vector<128x128xbf16>
    %cst_32 = arith.constant dense<0.000000e+00> : vector<8x128xf32>
    %48 = tpu.matmul %46, %47, %cst_32 {dimension_numbers = #tpu.dot_dimension_numbers<[1], [0], [0], [1], [0, 0, 1, 1], [], []>} : vector<8x128xbf16>, vector<128x128xbf16>, vector<8x128xf32> -> vector<8x128xf32>
    %c0_33 = arith.constant 0 : index
    %c0_34 = arith.constant 0 : index
    %49 = vector.load %arg13[%c0_33, %c0_34] : memref<1x128xf32, #tpu.memory_space<vmem>>, vector<1x128xf32>
    %50 = vector.broadcast %49 : vector<1x128xf32> to vector<8x128xf32>
    %51 = arith.addf %48, %50 : vector<8x128xf32>
    %c0_35 = arith.constant 0 : index
    %c0_36 = arith.constant 0 : index
    %52 = vector.load %arg14[%c0_35, %c0_36] : memref<8x128xf32, #tpu.memory_space<vmem>>, vector<8x128xf32>
    tpu.vector_store %arg14[%c0_35, %c0_36], %51 {strides = array<i32>} : memref<8x128xf32, #tpu.memory_space<vmem>>, vector<8x128xf32>,
    return
  }
  func.func @transform_0(%arg0: i32) -> (i32, i32) {
    %c0_i32 = arith.constant 0 : i32
    %c0_i32_0 = arith.constant 0 : i32
    return %arg0, %c0_i32 : i32, i32
  }
  func.func @transform_1(%arg0: i32) -> (i32, i32) {
    %c0_i32 = arith.constant 0 : i32
    %c0_i32_0 = arith.constant 0 : i32
    %c0_i32_1 = arith.constant 0 : i32
    return %c0_i32, %c0_i32_0 : i32, i32
  }
  func.func @transform_2(%arg0: i32) -> (i32, i32) {
    %c0_i32 = arith.constant 0 : i32
    %c0_i32_0 = arith.constant 0 : i32
    %c0_i32_1 = arith.constant 0 : i32
    return %c0_i32, %c0_i32_0 : i32, i32
  }
  func.func @transform_3(%arg0: i32) -> (i32, i32) {
    %c0_i32 = arith.constant 0 : i32
    %c0_i32_0 = arith.constant 0 : i32
    %c0_i32_1 = arith.constant 0 : i32
    return %c0_i32, %c0_i32_0 : i32, i32
  }
  func.func @transform_4(%arg0: i32) -> (i32, i32) {
    %c0_i32 = arith.constant 0 : i32
    %c0_i32_0 = arith.constant 0 : i32
    %c0_i32_1 = arith.constant 0 : i32
    return %c0_i32, %c0_i32_0 : i32, i32
  }
  func.func @transform_5(%arg0: i32) -> (i32, i32) {
    %c0_i32 = arith.constant 0 : i32
    %c0_i32_0 = arith.constant 0 : i32
    %c0_i32_1 = arith.constant 0 : i32
    return %c0_i32, %c0_i32_0 : i32, i32
  }
  func.func @transform_6(%arg0: i32) -> (i32, i32) {
    %c0_i32 = arith.constant 0 : i32
    %c0_i32_0 = arith.constant 0 : i32
    %c0_i32_1 = arith.constant 0 : i32
    return %c0_i32, %c0_i32_0 : i32, i32
  }
  func.func @transform_7(%arg0: i32) -> (i32, i32) {
    %c0_i32 = arith.constant 0 : i32
    %c0_i32_0 = arith.constant 0 : i32
    %c0_i32_1 = arith.constant 0 : i32
    return %c0_i32, %c0_i32_0 : i32, i32
  }
  func.func @transform_8(%arg0: i32) -> (i32, i32) {
    %c0_i32 = arith.constant 0 : i32
    %c0_i32_0 = arith.constant 0 : i32
    %c0_i32_1 = arith.constant 0 : i32
    return %c0_i32, %c0_i32_0 : i32, i32
  }
  func.func @transform_9(%arg0: i32) -> (i32, i32) {
    %c0_i32 = arith.constant 0 : i32
    %c0_i32_0 = arith.constant 0 : i32
    %c0_i32_1 = arith.constant 0 : i32
    return %c0_i32, %c0_i32_0 : i32, i32
  }
  func.func @transform_10(%arg0: i32) -> (i32, i32) {
    %c0_i32 = arith.constant 0 : i32
    %c0_i32_0 = arith.constant 0 : i32
    %c0_i32_1 = arith.constant 0 : i32
    return %c0_i32, %c0_i32_0 : i32, i32
  }
  func.func @transform_11(%arg0: i32) -> (i32, i32) {
    %c0_i32 = arith.constant 0 : i32
    %c0_i32_0 = arith.constant 0 : i32
    %c0_i32_1 = arith.constant 0 : i32
    return %c0_i32, %c0_i32_0 : i32, i32
  }
  func.func @transform_12(%arg0: i32) -> (i32, i32) {
    %c0_i32 = arith.constant 0 : i32
    %c0_i32_0 = arith.constant 0 : i32
    %c0_i32_1 = arith.constant 0 : i32
    return %c0_i32, %c0_i32_0 : i32, i32
  }
  func.func @transform_13(%arg0: i32) -> (i32, i32) {
    %c0_i32 = arith.constant 0 : i32
    %c0_i32_0 = arith.constant 0 : i32
    return %arg0, %c0_i32 : i32, i32
  }
}

module attributes {stable_mosaic.version = 11 : i64} {
  func.func @kernel(%arg0: i32, %arg1: memref<8x128xf32, #tpu.memory_space<vmem>>, %arg2: memref<128x128xbf16, #tpu.memory_space<vmem>>, %arg3: memref<1x128xf32, #tpu.memory_space<vmem>>, %arg4: memref<128x128xbf16, #tpu.memory_space<vmem>>, %arg5: memref<1x128xf32, #tpu.memory_space<vmem>>, %arg6: memref<128x128xbf16, #tpu.memory_space<vmem>>, %arg7: memref<1x128xf32, #tpu.memory_space<vmem>>, %arg8: memref<128x128xbf16, #tpu.memory_space<vmem>>, %arg9: memref<1x128xf32, #tpu.memory_space<vmem>>, %arg10: memref<128x128xbf16, #tpu.memory_space<vmem>>, %arg11: memref<1x128xf32, #tpu.memory_space<vmem>>, %arg12: memref<128x128xbf16, #tpu.memory_space<vmem>>, %arg13: memref<1x128xf32, #tpu.memory_space<vmem>>, %arg14: memref<8x128xf32, #tpu.memory_space<vmem>>) attributes {dimension_semantics = [#tpu.dimension_semantics<parallel>], iteration_bounds = array<i64: 1>, scalar_prefetch = 0 : i64, scratch_operands = 0 : i64, tpu.core_type = #tpu.core_type<tc>, window_params = [{transform_indices = @transform_0, window_bounds = array<i64: 8, 128>}, {pipeline_mode = #tpu.pipeline_mode<synchronous>, transform_indices = @transform_1, window_bounds = array<i64: 128, 128>}, {pipeline_mode = #tpu.pipeline_mode<synchronous>, transform_indices = @transform_2, window_bounds = array<i64: 1, 128>}, {pipeline_mode = #tpu.pipeline_mode<synchronous>, transform_indices = @transform_3, window_bounds = array<i64: 128, 128>}, {pipeline_mode = #tpu.pipeline_mode<synchronous>, transform_indices = @transform_4, window_bounds = array<i64: 1, 128>}, {pipeline_mode = #tpu.pipeline_mode<synchronous>, transform_indices = @transform_5, window_bounds = array<i64: 128, 128>}, {pipeline_mode = #tpu.pipeline_mode<synchronous>, transform_indices = @transform_6, window_bounds = array<i64: 1, 128>}, {pipeline_mode = #tpu.pipeline_mode<synchronous>, transform_indices = @transform_7, window_bounds = array<i64: 128, 128>}, {pipeline_mode = #tpu.pipeline_mode<synchronous>, transform_indices = @transform_8, window_bounds = array<i64: 1, 128>}, {pipeline_mode = #tpu.pipeline_mode<synchronous>, transform_indices = @transform_9, window_bounds = array<i64: 128, 128>}, {pipeline_mode = #tpu.pipeline_mode<synchronous>, transform_indices = @transform_10, window_bounds = array<i64: 1, 128>}, {pipeline_mode = #tpu.pipeline_mode<synchronous>, transform_indices = @transform_11, window_bounds = array<i64: 128, 128>}, {pipeline_mode = #tpu.pipeline_mode<synchronous>, transform_indices = @transform_12, window_bounds = array<i64: 1, 128>}, {transform_indices = @transform_13, window_bounds = array<i64: 8, 128>}]} {
    %c0 = arith.constant 0 : index
    %c0_0 = arith.constant 0 : index
    %0 = vector.load %arg1[%c0, %c0_0] : memref<8x128xf32, #tpu.memory_space<vmem>>, vector<8x128xf32>
    %1 = arith.truncf %0 : vector<8x128xf32> to vector<8x128xbf16>
    %c0_1 = arith.constant 0 : index
    %c0_2 = arith.constant 0 : index
    %2 = vector.load %arg2[%c0_1, %c0_2] : memref<128x128xbf16, #tpu.memory_space<vmem>>, vector<128x128xbf16>
    %cst = arith.constant dense<0.000000e+00> : vector<8x128xf32>
    %3 = tpu.matmul %1, %2, %cst {dimension_numbers = #tpu.dot_dimension_numbers<[1], [0], [0], [1], [0, 0, 1, 1], [], []>} : vector<8x128xbf16>, vector<128x128xbf16>, vector<8x128xf32> -> vector<8x128xf32>
    %c0_3 = arith.constant 0 : index
    %c0_4 = arith.constant 0 : index
    %4 = vector.load %arg3[%c0_3, %c0_4] : memref<1x128xf32, #tpu.memory_space<vmem>>, vector<1x128xf32>
    %5 = vector.broadcast %4 : vector<1x128xf32> to vector<8x128xf32>
    %6 = arith.addf %3, %5 : vector<8x128xf32>
    %cst_5 = arith.constant 1.000000e-01 : f32
    %7 = vector.broadcast %cst_5 : f32 to vector<8x128xf32>
    %8 = arith.mulf %7, %6 : vector<8x128xf32>
    %9 = arith.maximumf %6, %8 : vector<8x128xf32>
    %10 = arith.truncf %9 : vector<8x128xf32> to vector<8x128xbf16>
    %c0_6 = arith.constant 0 : index
    %c0_7 = arith.constant 0 : index
    %11 = vector.load %arg4[%c0_6, %c0_7] : memref<128x128xbf16, #tpu.memory_space<vmem>>, vector<128x128xbf16>
    %cst_8 = arith.constant dense<0.000000e+00> : vector<8x128xf32>
    %12 = tpu.matmul %10, %11, %cst_8 {dimension_numbers = #tpu.dot_dimension_numbers<[1], [0], [0], [1], [0, 0, 1, 1], [], []>} : vector<8x128xbf16>, vector<128x128xbf16>, vector<8x128xf32> -> vector<8x128xf32>
    %c0_9 = arith.constant 0 : index
    %c0_10 = arith.constant 0 : index
    %13 = vector.load %arg5[%c0_9, %c0_10] : memref<1x128xf32, #tpu.memory_space<vmem>>, vector<1x128xf32>
    %14 = vector.broadcast %13 : vector<1x128xf32> to vector<8x128xf32>
    %15 = arith.addf %12, %14 : vector<8x128xf32>
    %cst_11 = arith.constant 1.000000e-01 : f32
    %16 = vector.broadcast %cst_11 : f32 to vector<8x128xf32>
    %17 = arith.mulf %16, %15 : vector<8x128xf32>
    %18 = arith.maximumf %15, %17 : vector<8x128xf32>
    %19 = arith.truncf %18 : vector<8x128xf32> to vector<8x128xbf16>
    %c0_12 = arith.constant 0 : index
    %c0_13 = arith.constant 0 : index
    %20 = vector.load %arg6[%c0_12, %c0_13] : memref<128x128xbf16, #tpu.memory_space<vmem>>, vector<128x128xbf16>
    %cst_14 = arith.constant dense<0.000000e+00> : vector<8x128xf32>
    %21 = tpu.matmul %19, %20, %cst_14 {dimension_numbers = #tpu.dot_dimension_numbers<[1], [0], [0], [1], [0, 0, 1, 1], [], []>} : vector<8x128xbf16>, vector<128x128xbf16>, vector<8x128xf32> -> vector<8x128xf32>
    %c0_15 = arith.constant 0 : index
    %c0_16 = arith.constant 0 : index
    %22 = vector.load %arg7[%c0_15, %c0_16] : memref<1x128xf32, #tpu.memory_space<vmem>>, vector<1x128xf32>
    %23 = vector.broadcast %22 : vector<1x128xf32> to vector<8x128xf32>
    %24 = arith.addf %21, %23 : vector<8x128xf32>
    %cst_17 = arith.constant 1.000000e-01 : f32
    %25 = vector.broadcast %cst_17 : f32 to vector<8x128xf32>
    %26 = arith.mulf %25, %24 : vector<8x128xf32>
    %27 = arith.maximumf %24, %26 : vector<8x128xf32>
    %28 = arith.truncf %27 : vector<8x128xf32> to vector<8x128xbf16>
    %c0_18 = arith.constant 0 : index
    %c0_19 = arith.constant 0 : index
    %29 = vector.load %arg8[%c0_18, %c0_19] : memref<128x128xbf16, #tpu.memory_space<vmem>>, vector<128x128xbf16>
    %cst_20 = arith.constant dense<0.000000e+00> : vector<8x128xf32>
    %30 = tpu.matmul %28, %29, %cst_20 {dimension_numbers = #tpu.dot_dimension_numbers<[1], [0], [0], [1], [0, 0, 1, 1], [], []>} : vector<8x128xbf16>, vector<128x128xbf16>, vector<8x128xf32> -> vector<8x128xf32>
    %c0_21 = arith.constant 0 : index
    %c0_22 = arith.constant 0 : index
    %31 = vector.load %arg9[%c0_21, %c0_22] : memref<1x128xf32, #tpu.memory_space<vmem>>, vector<1x128xf32>
    %32 = vector.broadcast %31 : vector<1x128xf32> to vector<8x128xf32>
    %33 = arith.addf %30, %32 : vector<8x128xf32>
    %cst_23 = arith.constant 1.000000e-01 : f32
    %34 = vector.broadcast %cst_23 : f32 to vector<8x128xf32>
    %35 = arith.mulf %34, %33 : vector<8x128xf32>
    %36 = arith.maximumf %33, %35 : vector<8x128xf32>
    %37 = arith.truncf %36 : vector<8x128xf32> to vector<8x128xbf16>
    %c0_24 = arith.constant 0 : index
    %c0_25 = arith.constant 0 : index
    %38 = vector.load %arg10[%c0_24, %c0_25] : memref<128x128xbf16, #tpu.memory_space<vmem>>, vector<128x128xbf16>
    %cst_26 = arith.constant dense<0.000000e+00> : vector<8x128xf32>
    %39 = tpu.matmul %37, %38, %cst_26 {dimension_numbers = #tpu.dot_dimension_numbers<[1], [0], [0], [1], [0, 0, 1, 1], [], []>} : vector<8x128xbf16>, vector<128x128xbf16>, vector<8x128xf32> -> vector<8x128xf32>
    %c0_27 = arith.constant 0 : index
    %c0_28 = arith.constant 0 : index
    %40 = vector.load %arg11[%c0_27, %c0_28] : memref<1x128xf32, #tpu.memory_space<vmem>>, vector<1x128xf32>
    %41 = vector.broadcast %40 : vector<1x128xf32> to vector<8x128xf32>
    %42 = arith.addf %39, %41 : vector<8x128xf32>
    %cst_29 = arith.constant 1.000000e-01 : f32
    %43 = vector.broadcast %cst_29 : f32 to vector<8x128xf32>
    %44 = arith.mulf %43, %42 : vector<8x128xf32>
    %45 = arith.maximumf %42, %44 : vector<8x128xf32>
    %46 = arith.truncf %45 : vector<8x128xf32> to vector<8x128xbf16>
    %c0_30 = arith.constant 0 : index
    %c0_31 = arith.constant 0 : index
    %47 = vector.load %arg12[%c0_30, %c0_31] : memref<128x128xbf16, #tpu.memory_space<vmem>>, vector<128x128xbf16>
    %cst_32 = arith.constant dense<0.000000e+00> : vector<8x128xf32>
    %48 = tpu.matmul %46, %47, %cst_32 {dimension_numbers = #tpu.dot_dimension_numbers<[1], [0], [0], [1], [0, 0, 1, 1], [], []>} : vector<8x128xbf16>, vector<128x128xbf16>, vector<8x128xf32> -> vector<8x128xf32>
    %c0_33 = arith.constant 0 : index
    %c0_34 = arith.constant 0 : index
    %49 = vector.load %arg13[%c0_33, %c0_34] : memref<1x128xf32, #tpu.memory_space<vmem>>, vector<1x128xf32>
    %50 = vector.broadcast %49 : vector<1x128xf32> to vector<8x128xf32>
    %51 = arith.addf %48, %50 : vector<8x128xf32>
    %c0_35 = arith.constant 0 : index
    %c0_36 = arith.constant 0 : index
    %52 = vector.load %arg14[%c0_35, %c0_36] : memref<8x128xf32, #tpu.memory_space<vmem>>, vector<8x128xf32>
    tpu.vector_store %arg14[%c0_35, %c0_36], %51 {strides = array<i32>} : memref<8x128xf32, #tpu.memory_space<vmem>>, vector<8x128xf32>,
    return
  }
  func.func @transform_0(%arg0: i32) -> (i32, i32) {
    %c0_i32 = arith.constant 0 : i32
    %c0_i32_0 = arith.constant 0 : i32
    return %arg0, %c0_i32 : i32, i32
  }
  func.func @transform_1(%arg0: i32) -> (i32, i32) {
    %c0_i32 = arith.constant 0 : i32
    %c0_i32_0 = arith.constant 0 : i32
    %c0_i32_1 = arith.constant 0 : i32
    return %c0_i32, %c0_i32_0 : i32, i32
  }
  func.func @transform_2(%arg0: i32) -> (i32, i32) {
    %c0_i32 = arith.constant 0 : i32
    %c0_i32_0 = arith.constant 0 : i32
    %c0_i32_1 = arith.constant 0 : i32
    return %c0_i32, %c0_i32_0 : i32, i32
  }
  func.func @transform_3(%arg0: i32) -> (i32, i32) {
    %c0_i32 = arith.constant 0 : i32
    %c0_i32_0 = arith.constant 0 : i32
    %c0_i32_1 = arith.constant 0 : i32
    return %c0_i32, %c0_i32_0 : i32, i32
  }
  func.func @transform_4(%arg0: i32) -> (i32, i32) {
    %c0_i32 = arith.constant 0 : i32
    %c0_i32_0 = arith.constant 0 : i32
    %c0_i32_1 = arith.constant 0 : i32
    return %c0_i32, %c0_i32_0 : i32, i32
  }
  func.func @transform_5(%arg0: i32) -> (i32, i32) {
    %c0_i32 = arith.constant 0 : i32
    %c0_i32_0 = arith.constant 0 : i32
    %c0_i32_1 = arith.constant 0 : i32
    return %c0_i32, %c0_i32_0 : i32, i32
  }
  func.func @transform_6(%arg0: i32) -> (i32, i32) {
    %c0_i32 = arith.constant 0 : i32
    %c0_i32_0 = arith.constant 0 : i32
    %c0_i32_1 = arith.constant 0 : i32
    return %c0_i32, %c0_i32_0 : i32, i32
  }
  func.func @transform_7(%arg0: i32) -> (i32, i32) {
    %c0_i32 = arith.constant 0 : i32
    %c0_i32_0 = arith.constant 0 : i32
    %c0_i32_1 = arith.constant 0 : i32
    return %c0_i32, %c0_i32_0 : i32, i32
  }
  func.func @transform_8(%arg0: i32) -> (i32, i32) {
    %c0_i32 = arith.constant 0 : i32
    %c0_i32_0 = arith.constant 0 : i32
    %c0_i32_1 = arith.constant 0 : i32
    return %c0_i32, %c0_i32_0 : i32, i32
  }
  func.func @transform_9(%arg0: i32) -> (i32, i32) {
    %c0_i32 = arith.constant 0 : i32
    %c0_i32_0 = arith.constant 0 : i32
    %c0_i32_1 = arith.constant 0 : i32
    return %c0_i32, %c0_i32_0 : i32, i32
  }
  func.func @transform_10(%arg0: i32) -> (i32, i32) {
    %c0_i32 = arith.constant 0 : i32
    %c0_i32_0 = arith.constant 0 : i32
    %c0_i32_1 = arith.constant 0 : i32
    return %c0_i32, %c0_i32_0 : i32, i32
  }
  func.func @transform_11(%arg0: i32) -> (i32, i32) {
    %c0_i32 = arith.constant 0 : i32
    %c0_i32_0 = arith.constant 0 : i32
    %c0_i32_1 = arith.constant 0 : i32
    return %c0_i32, %c0_i32_0 : i32, i32
  }
  func.func @transform_12(%arg0: i32) -> (i32, i32) {
    %c0_i32 = arith.constant 0 : i32
    %c0_i32_0 = arith.constant 0 : i32
    %c0_i32_1 = arith.constant 0 : i32
    return %c0_i32, %c0_i32_0 : i32, i32
  }
  func.func @transform_13(%arg0: i32) -> (i32, i32) {
    %c0_i32 = arith.constant 0 : i32
    %c0_i32_0 = arith.constant 0 : i32
    return %arg0, %c0_i32 : i32, i32
  }
}

</mosaic_0001>

<bundles_post_ra>
// kernel: tpu_custom_call.1
= control target key start
LH: loop header
LB: loop body
LE: loop exit
PB: predicated region body
PF: predicated region fallthrough
CT: control target
= control target key end

     0   :  { %18 = vsyncpa [#allocation3], 0  ;;  %s1589_s0 = inlined_call_operand.hbm [shape: f32[8,128], index: 0, kind: input, shape index: {}]   ;;  %s1590_s1 = inlined_call_operand.hbm [shape: bf16[128,128], index: 1, kind: input, shape index: {}]   ;;  %s1591_s2 = inlined_call_operand.vmem [shape: f32[1,128], index: 2, kind: input, shape index: {}]   ;;  %s1592_s3 = inlined_call_operand.hbm [shape: bf16[128,128], index: 3, kind: input, shape index: {}]   ;;  %s1593_s4 = inlined_call_operand.vmem [shape: f32[1,128], index: 4, kind: input, shape index: {}]   ;;  %s1594_s5 = inlined_call_operand.hbm [shape: bf16[128,128], index: 5, kind: input, shape index: {}]   ;;  %s1595_s6 = inlined_call_operand.vmem [shape: f32[1,128], index: 6, kind: input, shape index: {}]   ;;  %s1596_s7 = inlined_call_operand.hbm [shape: bf16[128,128], index: 7, kind: input, shape index: {}]   ;;  %s1597_s8 = inlined_call_operand.vmem [shape: f32[1,128], index: 8, kind: input, shape index: {}]   ;;  %s1598_s9 = inlined_call_operand.hbm [shape: bf16[128,128], index: 9, kind: input, shape index: {}]   ;;  %s1599_s10 = inlined_call_operand.vmem [shape: f32[1,128], index: 10, kind: input, shape index: {}]   ;;  %s1600_s11 = inlined_call_operand.hbm [shape: bf16[128,128], index: 11, kind: input, shape index: {}]   ;;  %s1601_s12 = inlined_call_operand.vmem [shape: f32[1,128], index: 12, kind: input, shape index: {}]   ;;  %s1602_s13 = inlined_call_operand.hbm [shape: f32[8,128], index: 13, kind: output, shape index: {}]  }
   0x1   :  { %19 = vsyncpa [#allocation6], 0 }
   0x2   :  { %20 = vsyncpa [#allocation9], 0 }
   0x3   :  { %21 = vsyncpa [#allocation12], 0 }
   0x4   :  { %22 = vsyncpa [#allocation4], 0  ;;  %s1315_s25 = smov [#allocation5]   ;;  %s1129_s29 = scalar_lea.hbm %s1590_s1, 1024 }
   0x5   :  { %s38_s26 = sshll.u32 %s1315_s25, 4  ;;  %p1130_p0 = scmp.ne.s32.totalorder %s1590_s1, %s1129_s29  ;;  %s39_s26 = int_to_ptr.vmem [resolvable:$true] %s38_s26 }
   0x6   :  { %p1133_p1 = scmp.lt.u32.totalorder %s1129_s29, %s1590_s1 }
   0x8   :  { %p1135_p2 = pnand %p1133_p1, %p1130_p0 }
   0xa   :  { %1138 = shalt.err (!%p1135_p2)
}
   0xb   :  { %s1139_s17 = scalar_lea.vmem %s39_s26, 1024  ;;  %p1144_p4 = scmp.lt.s32.totalorder %s39_s26, %s39_s26 }
   0xc   :  { %p1140_p3 = scmp.ne.s32.totalorder %s39_s26, %s1139_s17  ;;  %p1145_p5 = scmp.lt.s32.totalorder %s1139_s17, %s1139_s17 }
   0xe   :  { %p1146_p6 = por %p1145_p5, %p1144_p4 }
  0x10   :  { %p1147_p7 = pnand %p1146_p6, %p1140_p3 }
  0x12   :  { %1150 = shalt.err (!%p1147_p7)
}
  0x13   :  { %s1316_s18 = smov 64   ;;  %s1317_s19 = smov 4  }
  0x14   :  { %44 = dma.hbm_to_vmem [thread:$0]  %s1590_s1, 1024, %s39_s26, [#allocation6], %s1316_s18, %s1316_s18, %s1317_s19  }
  0x15   :  { %s1318_s22 = smov [#allocation8]   ;;  %s1319_s24 = smov [#allocation11]  }
  0x16   :  { %s66_s23 = sshll.u32 %s1318_s22, 4  ;;  %s94_s25 = sshll.u32 %s1319_s24, 4  ;;  %s67_s23 = int_to_ptr.vmem [resolvable:$true] %s66_s23  ;;  %s95_s25 = int_to_ptr.vmem [resolvable:$true] %s94_s25 }
  0x17   :  { %s1151_s29 = scalar_lea.hbm %s1594_s5, 1024 }
  0x18   :  { %p1152_p8 = scmp.ne.s32.totalorder %s1594_s5, %s1151_s29  ;;  %p1155_p9 = scmp.lt.u32.totalorder %s1151_s29, %s1594_s5 }
  0x1a   :  { %p1157_p10 = pnand %p1155_p9, %p1152_p8 }
  0x1c   :  { %1160 = shalt.err (!%p1157_p10)
}
  0x1d   :  { %s1161_s1 = scalar_lea.vmem %s67_s23, 1024  ;;  %p1166_p12 = scmp.lt.s32.totalorder %s67_s23, %s67_s23 }
  0x1e   :  { %p1162_p11 = scmp.ne.s32.totalorder %s67_s23, %s1161_s1  ;;  %p1167_p13 = scmp.lt.s32.totalorder %s1161_s1, %s1161_s1 }
  0x20   :  { %p1168_p0 = por %p1167_p13, %p1166_p12 }
  0x22   :  { %p1169_p1 = pnand %p1168_p0, %p1162_p11 }
  0x24   :  { %1172 = shalt.err (!%p1169_p1)
}
  0x25   :  { %72 = dma.hbm_to_vmem [thread:$0]  %s1594_s5, 1024, %s67_s23, [#allocation9], %s1316_s18, %s1316_s18, %s1317_s19  }
  0x26   :  { %s1173_s22 = scalar_lea.hbm %s1598_s9, 1024 }
  0x27   :  { %p1174_p2 = scmp.ne.s32.totalorder %s1598_s9, %s1173_s22  ;;  %p1177_p3 = scmp.lt.u32.totalorder %s1173_s22, %s1598_s9 }
  0x29   :  { %p1179_p4 = pnand %p1177_p3, %p1174_p2 }
  0x2b   :  { %1182 = shalt.err (!%p1179_p4)
}
  0x2c   :  { %s1183_s30 = scalar_lea.vmem %s95_s25, 1024  ;;  %p1188_p6 = scmp.lt.s32.totalorder %s95_s25, %s95_s25 }
  0x2d   :  { %p1184_p5 = scmp.ne.s32.totalorder %s95_s25, %s1183_s30  ;;  %p1189_p7 = scmp.lt.s32.totalorder %s1183_s30, %s1183_s30 }
  0x2f   :  { %p1190_p8 = por %p1189_p7, %p1188_p6 }
  0x31   :  { %p1191_p9 = pnand %p1190_p8, %p1184_p5 }
  0x33   :  { %1194 = shalt.err (!%p1191_p9)
}
  0x34   :  { %100 = dma.hbm_to_vmem [thread:$0]  %s1598_s9, 1024, %s95_s25, [#allocation12], %s1316_s18, %s1316_s18, %s1317_s19  }
  0x35   :  { %s1320_s14 = smov [#allocation2]   ;;  %s1321_s16 = smov [#allocation7]  }
  0x36   :  { %s29_s15 = sshll.u32 %s1320_s14, 4  ;;  %s52_s1 = sshll.u32 %s1321_s16, 4  ;;  %s30_s15 = int_to_ptr.vmem [resolvable:$true] %s29_s15  ;;  %s53_s1 = int_to_ptr.vmem [resolvable:$true] %s52_s1 }
  0x37   :  { %s1195_s20 = scalar_lea.hbm %s1589_s0, 128 }
  0x38   :  { %p1196_p10 = scmp.ne.s32.totalorder %s1589_s0, %s1195_s20  ;;  %p1199_p11 = scmp.lt.u32.totalorder %s1195_s20, %s1589_s0 }
  0x3a   :  { %p1201_p12 = pnand %p1199_p11, %p1196_p10 }
  0x3c   :  { %1204 = shalt.err (!%p1201_p12)
}
  0x3d   :  { %s1205_s9 = scalar_lea.vmem %s30_s15, 128  ;;  %p1210_p0 = scmp.lt.s32.totalorder %s30_s15, %s30_s15 }
  0x3e   :  { %p1206_p13 = scmp.ne.s32.totalorder %s30_s15, %s1205_s9  ;;  %p1211_p1 = scmp.lt.s32.totalorder %s1205_s9, %s1205_s9 }
  0x40   :  { %p1212_p2 = por %p1211_p1, %p1210_p0 }
  0x42   :  { %p1213_p3 = pnand %p1212_p2, %p1206_p13 }
  0x44   :  { %1216 = shalt.err (!%p1213_p3)
}
  0x45   :  { %32 = dma.hbm_to_vmem [thread:$0]  %s1589_s0, 128, %s30_s15, [#allocation3]  }
  0x46   :  { %s1217_s5 = scalar_lea.hbm %s1592_s3, 1024 }
  0x47   :  { %p1218_p4 = scmp.ne.s32.totalorder %s1592_s3, %s1217_s5  ;;  %p1221_p5 = scmp.lt.u32.totalorder %s1217_s5, %s1592_s3 }
  0x49   :  { %p1223_p6 = pnand %p1221_p5, %p1218_p4 }
  0x4b   :  { %1226 = shalt.err (!%p1223_p6)
}
  0x4c   :  { %s1227_s17 = scalar_lea.vmem %s53_s1, 1024  ;;  %p1232_p8 = scmp.lt.s32.totalorder %s53_s1, %s53_s1 }
  0x4d   :  { %p1228_p7 = scmp.ne.s32.totalorder %s53_s1, %s1227_s17  ;;  %p1233_p9 = scmp.lt.s32.totalorder %s1227_s17, %s1227_s17 }
  0x4f   :  { %p1234_p10 = por %p1233_p9, %p1232_p8 }
  0x51   :  { %p1235_p11 = pnand %p1234_p10, %p1228_p7 }
  0x53   :  { %1238 = shalt.err (!%p1235_p11)
}
  0x54   :  { %58 = dma.hbm_to_vmem [thread:$0]  %s1592_s3, 1024, %s53_s1, [#allocation6], %s1316_s18, %s1316_s18, %s1317_s19  }
  0x55   :  { %s1322_s20 = smov [#allocation10]   ;;  %s1323_s22 = smov [#allocation13]  }
  0x56   :  { %s80_s21 = sshll.u32 %s1322_s20, 4  ;;  %s108_s24 = sshll.u32 %s1323_s22, 4  ;;  %s81_s21 = int_to_ptr.vmem [resolvable:$true] %s80_s21  ;;  %s109_s24 = int_to_ptr.vmem [resolvable:$true] %s108_s24 }
  0x57   :  { %s1239_s25 = scalar_lea.hbm %s1596_s7, 1024 }
  0x58   :  { %p1240_p12 = scmp.ne.s32.totalorder %s1596_s7, %s1239_s25  ;;  %p1243_p13 = scmp.lt.u32.totalorder %s1239_s25, %s1596_s7 }
  0x5a   :  { %p1245_p0 = pnand %p1243_p13, %p1240_p12 }
  0x5c   :  { %1248 = shalt.err (!%p1245_p0)
}
  0x5d   :  { %s1249_s3 = scalar_lea.vmem %s81_s21, 1024  ;;  %p1254_p2 = scmp.lt.s32.totalorder %s81_s21, %s81_s21 }
  0x5e   :  { %p1250_p1 = scmp.ne.s32.totalorder %s81_s21, %s1249_s3  ;;  %p1255_p3 = scmp.lt.s32.totalorder %s1249_s3, %s1249_s3 }
  0x60   :  { %p1256_p4 = por %p1255_p3, %p1254_p2 }
  0x62   :  { %p1257_p5 = pnand %p1256_p4, %p1250_p1 }
  0x64   :  { %1260 = shalt.err (!%p1257_p5)
}
  0x65   :  { %86 = dma.hbm_to_vmem [thread:$0]  %s1596_s7, 1024, %s81_s21, [#allocation9], %s1316_s18, %s1316_s18, %s1317_s19  }
  0x66   :  { %s1261_s26 = scalar_lea.hbm %s1600_s11, 1024 }
  0x67   :  { %p1262_p6 = scmp.ne.s32.totalorder %s1600_s11, %s1261_s26  ;;  %p1265_p7 = scmp.lt.u32.totalorder %s1261_s26, %s1600_s11 }
  0x69   :  { %p1267_p8 = pnand %p1265_p7, %p1262_p6 }
  0x6b   :  { %1270 = shalt.err (!%p1267_p8)
}
  0x6c   :  { %s1271_s22 = scalar_lea.vmem %s109_s24, 1024  ;;  %p1276_p10 = scmp.lt.s32.totalorder %s109_s24, %s109_s24 }
  0x6d   :  { %p1272_p9 = scmp.ne.s32.totalorder %s109_s24, %s1271_s22  ;;  %p1277_p11 = scmp.lt.s32.totalorder %s1271_s22, %s1271_s22 }
  0x6f   :  { %p1278_p12 = por %p1277_p11, %p1276_p10 }
  0x71   :  { %p1279_p13 = pnand %p1278_p12, %p1272_p9 }
  0x73   :  { %1282 = shalt.err (!%p1279_p13)
}
  0x74   :  { %114 = dma.hbm_to_vmem [thread:$0]  %s1600_s11, 1024, %s109_s24, [#allocation12], %s1316_s18, %s1316_s18, %s1317_s19  }
  0x75   :  { %1305 = dma.done.wait [#allocation3], 128  }
  0x76   :  { %1306 = vsyncadd [#allocation3], 4294967168 }
  0x77   :  { %1307 = dma.done.wait [#allocation6], 2048  }
  0x78   :  { %1308 = vsyncadd [#allocation6], 4294965248 }
  0x79   :  { %1309 = dma.done.wait [#allocation9], 2048  }
  0x7a   :  { %1310 = vsyncadd [#allocation9], 4294965248 }
  0x7b   :  { %1311 = dma.done.wait [#allocation12], 2048  }
  0x7c   :  { %1312 = vsyncadd [#allocation12], 4294965248  ;;  %v1324_v0 = vmov 0.0   ;;  %vm1325_vm0 = vmmov 0   ;;  %v1081_v1 = vld [vmem:[#allocation5] sm:$0xff]   ;;  %v1082_v2 = vld [vmem:[#allocation5 + $0x8] sm:$0xff]  }
  0x7d   :  { %949 = vmatprep.subr.bf16.mxu0 %v1324_v0  ;;  %965 = vmatprep.mubr.msk.bf16.mxu0 %vm1325_vm0, %v1324_v0  ;;  %v1083_v3 = vld [vmem:[#allocation5 + $0x10] sm:$0xff]   ;;  %v1089_v4 = vld [vmem:[#allocation7] sm:$0xff]   ;;  %v1084_v5 = vld [vmem:[#allocation5 + $0x18] sm:$0xff]   ;;  %s1326_s29 = smov [#allocation14]  }
  0x7e   :  { %969 = vmatprep.subr.bf16.mxu1 %v1324_v0  ;;  %985 = vmatprep.mubr.msk.bf16.mxu1 %vm1325_vm0, %v1324_v0  ;;  %v1090_v6 = vld [vmem:[#allocation7 + $0x8] sm:$0xff]   ;;  %v1085_v7 = vld [vmem:[#allocation5 + $0x20] sm:$0xff]   ;;  %v1091_v8 = vld [vmem:[#allocation7 + $0x10] sm:$0xff]   ;;  %s829_s30 = sshll.u32 %s1326_s29, 4  ;;  %s830_s30 = int_to_ptr.vmem [resolvable:$true] %s829_s30 }
  0x7f   :  { %950 = vmatpush3.bf16.msra.mxu0 %v1081_v1  ;;  %970 = vmatpush3.bf16.msra.mxu1 %v1089_v4  ;;  %v1086_v9 = vld [vmem:[#allocation5 + $0x28] sm:$0xff]   ;;  %v1092_v10 = vld [vmem:[#allocation7 + $0x18] sm:$0xff]   ;;  %v1087_v11 = vld [vmem:[#allocation5 + $0x30] sm:$0xff]   ;;  %p1288_p1 = scmp.lt.s32.totalorder %s830_s30, %s830_s30 }
  0x80   :  { %951 = vmatprep.subr.bf16.mxu0 %v1324_v0  ;;  %971 = vmatprep.subr.bf16.mxu1 %v1324_v0  ;;  %v1093_v12 = vld [vmem:[#allocation7 + $0x20] sm:$0xff]   ;;  %v1088_v13 = vld [vmem:[#allocation5 + $0x38] sm:$0xff]   ;;  %v1094_v15 = vld [vmem:[#allocation7 + $0x28] sm:$0xff]  }
  0x81   :  { %v139_v14 = vld [vmem:[#allocation2] sm:$0xff]  ;;  %v1095_v17 = vld [vmem:[#allocation7 + $0x30] sm:$0xff]   ;;  %v1097_v19 = vld [vmem:[#allocation8] sm:$0xff]  }
  0x82   :  { %v140_v16 = vpack.c.bf16 %v139_v14, %v139_v14  ;;  %v1096_v18 = vld [vmem:[#allocation7 + $0x38] sm:$0xff]   ;;  %v1098_v20 = vld [vmem:[#allocation8 + $0x8] sm:$0xff]   ;;  %v1099_v21 = vld [vmem:[#allocation8 + $0x10] sm:$0xff]  }
  0x83   :  { %952 = vmatpush3.bf16.msra.mxu0 %v1082_v2  ;;  %972 = vmatpush3.bf16.msra.mxu1 %v1090_v6  ;;  %v1100_v22 = vld [vmem:[#allocation8 + $0x18] sm:$0xff]   ;;  %v1101_v23 = vld [vmem:[#allocation8 + $0x20] sm:$0xff]   ;;  %v1102_v24 = vld [vmem:[#allocation8 + $0x28] sm:$0xff]  }
  0x84   :  { %953 = vmatprep.subr.bf16.mxu0 %v1324_v0  ;;  %973 = vmatprep.subr.bf16.mxu1 %v1324_v0  ;;  %v841_v25 = vld [vmem:[%s1591_s2] ss:$0 sm:$0xff]  ;;  %v1103_v34 = vld [vmem:[#allocation8 + $0x30] sm:$0xff]   ;;  %v1105_v36 = vld [vmem:[#allocation10] sm:$0xff]  }
  0x85   :  { %v1104_v35 = vld [vmem:[#allocation8 + $0x38] sm:$0xff]   ;;  %v1106_v37 = vld [vmem:[#allocation10 + $0x8] sm:$0xff]   ;;  %v1107_v38 = vld [vmem:[#allocation10 + $0x10] sm:$0xff]  }
  0x86   :  { %v1108_v39 = vld [vmem:[#allocation10 + $0x18] sm:$0xff]   ;;  %v1109_v40 = vld [vmem:[#allocation10 + $0x20] sm:$0xff]   ;;  %v1110_v41 = vld [vmem:[#allocation10 + $0x28] sm:$0xff]  }
  0x87   :  { %954 = vmatpush3.bf16.msra.mxu0 %v1083_v3  ;;  %974 = vmatpush3.bf16.msra.mxu1 %v1091_v8  ;;  %v850_v42 = vld [vmem:[%s1593_s4] ss:$0 sm:$0xff]  ;;  %v1111_v51 = vld [vmem:[#allocation10 + $0x30] sm:$0xff]   ;;  %v1113_v53 = vld [vmem:[#allocation11] sm:$0xff]  }
  0x88   :  { %955 = vmatprep.subr.bf16.mxu0 %v1324_v0  ;;  %975 = vmatprep.subr.bf16.mxu1 %v1324_v0  ;;  %v1112_v52 = vld [vmem:[#allocation10 + $0x38] sm:$0xff]   ;;  %v1114_v54 = vld [vmem:[#allocation11 + $0x8] sm:$0xff]   ;;  %v1115_v55 = vld [vmem:[#allocation11 + $0x10] sm:$0xff]  }
  0x89   :  { %v1116_v56 = vld [vmem:[#allocation11 + $0x18] sm:$0xff]   ;;  %v1117_v57 = vld [vmem:[#allocation11 + $0x20] sm:$0xff]   ;;  %v1118_v58 = vld [vmem:[#allocation11 + $0x28] sm:$0xff]  }
  0x8a   :  { %v859_v59 = vld [vmem:[%s1595_s6] ss:$0 sm:$0xff]  ;;  %v1122_v8 = vld [vmem:[#allocation13 + $0x8] sm:$0xff]  }
  0x8b   :  { %956 = vmatpush3.bf16.msra.mxu0 %v1084_v5  ;;  %976 = vmatpush3.bf16.msra.mxu1 %v1092_v10  ;;  %v1119_v5 = vld [vmem:[#allocation11 + $0x30] sm:$0xff]   ;;  %v1120_v6 = vld [vmem:[#allocation11 + $0x38] sm:$0xff]  }
  0x8c   :  { %957 = vmatprep.subr.bf16.mxu0 %v1324_v0  ;;  %977 = vmatprep.subr.bf16.mxu1 %v1324_v0  ;;  %v1124_v10 = vld [vmem:[#allocation13 + $0x18] sm:$0xff]  }
  0x8f   :  { %958 = vmatpush3.bf16.msra.mxu0 %v1085_v7  ;;  %978 = vmatpush3.bf16.msra.mxu1 %v1093_v12  ;;  %v1121_v7 = vld [vmem:[#allocation13] sm:$0xff]   ;;  %v1126_v12 = vld [vmem:[#allocation13 + $0x28] sm:$0xff]  }
  0x90   :  { %959 = vmatprep.subr.bf16.mxu0 %v1324_v0  ;;  %979 = vmatprep.subr.bf16.mxu1 %v1324_v0 }
  0x93   :  { %960 = vmatpush3.bf16.msra.mxu0 %v1086_v9  ;;  %980 = vmatpush3.bf16.msra.mxu1 %v1094_v15  ;;  %v1123_v9 = vld [vmem:[#allocation13 + $0x10] sm:$0xff]  }
  0x94   :  { %961 = vmatprep.subr.bf16.mxu0 %v1324_v0  ;;  %981 = vmatprep.subr.bf16.mxu1 %v1324_v0 }
  0x97   :  { %962 = vmatpush3.bf16.msra.mxu0 %v1087_v11  ;;  %982 = vmatpush3.bf16.msra.mxu1 %v1095_v17  ;;  %v1125_v11 = vld [vmem:[#allocation13 + $0x20] sm:$0xff]  }
  0x98   :  { %963 = vmatprep.subr.bf16.mxu0 %v1324_v0  ;;  %983 = vmatprep.subr.bf16.mxu1 %v1324_v0 }
  0x9b   :  { %964 = vmatpush3.bf16.msra.mxu0 %v1088_v13  ;;  %984 = vmatpush3.bf16.msra.mxu1 %v1096_v18  ;;  %v868_v13 = vld [vmem:[%s1597_s8] ss:$0 sm:$0xff] }
  0x9c   :  { %989 = vmatprep.subr.bf16.mxu0 %v1324_v0  ;;  %1009 = vmatprep.subr.bf16.mxu1 %v1324_v0 }
  0x9e   :  { %966 = vmatmul.mubr.bf16.vlgmr.msra.gmra.mrb[0].mxu0 %v140_v16 }
  0x9f   :  { %1005 = vmatprep.mubr.msk.bf16.mxu0 %vm1325_vm0, %v1324_v0  ;;  %990 = vmatpush3.bf16.msra.mxu0 %v1097_v19 }
  0xa0   :  { %991 = vmatprep.subr.bf16.mxu0 %v1324_v0 }
  0xa3   :  { %992 = vmatpush3.bf16.msra.mxu0 %v1098_v20 }
  0xa4   :  { %993 = vmatprep.subr.bf16.mxu0 %v1324_v0 }
  0xa7   :  { %994 = vmatpush3.bf16.msra.mxu0 %v1099_v21 }
  0xa8   :  { %995 = vmatprep.subr.bf16.mxu0 %v1324_v0 }
  0xab   :  { %996 = vmatpush3.bf16.msra.mxu0 %v1100_v22  ;;  %v1127_v22 = vld [vmem:[#allocation13 + $0x30] sm:$0xff]  }
  0xac   :  { %997 = vmatprep.subr.bf16.mxu0 %v1324_v0 }
  0xaf   :  { %998 = vmatpush3.bf16.msra.mxu0 %v1101_v23  ;;  %v1128_v23 = vld [vmem:[#allocation13 + $0x38] sm:$0xff]  }
  0xb0   :  { %999 = vmatprep.subr.bf16.mxu0 %v1324_v0 }
  0xb3   :  { %1000 = vmatpush3.bf16.msra.mxu0 %v1102_v24  ;;  %v877_v24 = vld [vmem:[%s1599_s10] ss:$0 sm:$0xff]  ;;  %s1283_s10 = scalar_lea.vmem %s830_s30, 128 }
  0xb4   :  { %1001 = vmatprep.subr.bf16.mxu0 %v1324_v0  ;;  %p1284_p0 = scmp.ne.s32.totalorder %s830_s30, %s1283_s10  ;;  %p1289_p2 = scmp.lt.s32.totalorder %s1283_s10, %s1283_s10 }
  0xb6   :  { %p1290_p3 = por %p1289_p2, %p1288_p1 }
  0xb7   :  { %1002 = vmatpush3.bf16.msra.mxu0 %v1103_v34 }
  0xb8   :  { %1003 = vmatprep.subr.bf16.mxu0 %v1324_v0  ;;  %p1291_p4 = pnand %p1290_p3, %p1284_p0 }
  0xbb   :  { %1004 = vmatpush3.bf16.msra.mxu0 %v1104_v35 }
  0xbc   :  { %1029 = vmatprep.subr.bf16.mxu0 %v1324_v0 }
 0x171   :  { %v246_v26 = vpop.f32.mrb[0].mxu0 }
 0x172   :  { %v247_v27 = vadd.f32 %v841_v25, %v246_v26  ;;  %v967_v28 = vpop.f32.mrb[1].mxu0 }
 0x173   :  { %v249_v29 = vpop.f32.mrb[2].mxu0 }
 0x174   :  { %v252_v30 = vmul.f32 0.1, %v247_v27  ;;  %v968_v31 = vpop.f32.mrb[3].mxu0 }
 0x176   :  { %v253_v32 = vmax.f32 %v247_v27, %v252_v30 }
 0x178   :  { %v254_v33 = vpack.c.bf16 %v253_v32, %v253_v32 }
 0x17a   :  { %986 = vmatmul.mubr.bf16.vlgmr.msra.gmra.mrb[0].mxu1 %v254_v33  ;;  %v886_v33 = vld [vmem:[%s1601_s12] ss:$0 sm:$0xff] }
 0x17b   :  { %1025 = vmatprep.mubr.msk.bf16.mxu1 %vm1325_vm0, %v1324_v0  ;;  %1010 = vmatpush3.bf16.msra.mxu1 %v1105_v36 }
 0x17c   :  { %1011 = vmatprep.subr.bf16.mxu1 %v1324_v0 }
 0x17f   :  { %1012 = vmatpush3.bf16.msra.mxu1 %v1106_v37 }
 0x180   :  { %1013 = vmatprep.subr.bf16.mxu1 %v1324_v0 }
 0x183   :  { %1014 = vmatpush3.bf16.msra.mxu1 %v1107_v38 }
 0x184   :  { %1015 = vmatprep.subr.bf16.mxu1 %v1324_v0 }
 0x187   :  { %1016 = vmatpush3.bf16.msra.mxu1 %v1108_v39 }
 0x188   :  { %1017 = vmatprep.subr.bf16.mxu1 %v1324_v0 }
 0x18b   :  { %1018 = vmatpush3.bf16.msra.mxu1 %v1109_v40 }
 0x18c   :  { %1019 = vmatprep.subr.bf16.mxu1 %v1324_v0 }
 0x18f   :  { %1020 = vmatpush3.bf16.msra.mxu1 %v1110_v41 }
 0x190   :  { %1021 = vmatprep.subr.bf16.mxu1 %v1324_v0 }
 0x193   :  { %1022 = vmatpush3.bf16.msra.mxu1 %v1111_v51 }
 0x194   :  { %1023 = vmatprep.subr.bf16.mxu1 %v1324_v0 }
 0x197   :  { %1024 = vmatpush3.bf16.msra.mxu1 %v1112_v52 }
 0x198   :  { %1049 = vmatprep.subr.bf16.mxu1 %v1324_v0 }
 0x24d   :  { %v360_v43 = vpop.f32.mrb[0].mxu1 }
 0x24e   :  { %v361_v44 = vadd.f32 %v850_v42, %v360_v43  ;;  %v987_v45 = vpop.f32.mrb[1].mxu1 }
 0x24f   :  { %v363_v46 = vpop.f32.mrb[2].mxu1 }
 0x250   :  { %v366_v47 = vmul.f32 0.1, %v361_v44  ;;  %v988_v48 = vpop.f32.mrb[3].mxu1 }
 0x252   :  { %v367_v49 = vmax.f32 %v361_v44, %v366_v47 }
 0x254   :  { %v368_v50 = vpack.c.bf16 %v367_v49, %v367_v49 }
 0x256   :  { %1006 = vmatmul.mubr.bf16.vlgmr.msra.gmra.mrb[4].mxu0 %v368_v50 }
 0x257   :  { %1045 = vmatprep.mubr.msk.bf16.mxu0 %vm1325_vm0, %v1324_v0  ;;  %1030 = vmatpush3.bf16.msra.mxu0 %v1113_v53 }
 0x258   :  { %1031 = vmatprep.subr.bf16.mxu0 %v1324_v0 }
 0x25b   :  { %1032 = vmatpush3.bf16.msra.mxu0 %v1114_v54 }
 0x25c   :  { %1033 = vmatprep.subr.bf16.mxu0 %v1324_v0 }
 0x25f   :  { %1034 = vmatpush3.bf16.msra.mxu0 %v1115_v55 }
 0x260   :  { %1035 = vmatprep.subr.bf16.mxu0 %v1324_v0 }
 0x263   :  { %1036 = vmatpush3.bf16.msra.mxu0 %v1116_v56 }
 0x264   :  { %1037 = vmatprep.subr.bf16.mxu0 %v1324_v0 }
 0x267   :  { %1038 = vmatpush3.bf16.msra.mxu0 %v1117_v57 }
 0x268   :  { %1039 = vmatprep.subr.bf16.mxu0 %v1324_v0 }
 0x26b   :  { %1040 = vmatpush3.bf16.msra.mxu0 %v1118_v58 }
 0x26c   :  { %1041 = vmatprep.subr.bf16.mxu0 %v1324_v0 }
 0x26f   :  { %1042 = vmatpush3.bf16.msra.mxu0 %v1119_v5 }
 0x270   :  { %1043 = vmatprep.subr.bf16.mxu0 %v1324_v0 }
 0x273   :  { %1044 = vmatpush3.bf16.msra.mxu0 %v1120_v6 }
 0x329   :  { %v474_v60 = vpop.f32.mrb[4].mxu0 }
 0x32a   :  { %v475_v61 = vadd.f32 %v859_v59, %v474_v60  ;;  %v1007_v62 = vpop.f32.mrb[5].mxu0 }
 0x32b   :  { %v477_v63 = vpop.f32.mrb[6].mxu0 }
 0x32c   :  { %v480_v1 = vmul.f32 0.1, %v475_v61  ;;  %v1008_v2 = vpop.f32.mrb[7].mxu0 }
 0x32e   :  { %v481_v3 = vmax.f32 %v475_v61, %v480_v1 }
 0x330   :  { %v482_v4 = vpack.c.bf16 %v481_v3, %v481_v3 }
 0x332   :  { %1026 = vmatmul.mubr.bf16.vlgmr.msra.gmra.mrb[4].mxu1 %v482_v4 }
 0x333   :  { %1065 = vmatprep.mubr.msk.bf16.mxu1 %vm1325_vm0, %v1324_v0  ;;  %1050 = vmatpush3.bf16.msra.mxu1 %v1121_v7 }
 0x334   :  { %1051 = vmatprep.subr.bf16.mxu1 %v1324_v0 }
 0x337   :  { %1052 = vmatpush3.bf16.msra.mxu1 %v1122_v8 }
 0x338   :  { %1053 = vmatprep.subr.bf16.mxu1 %v1324_v0 }
 0x33b   :  { %1054 = vmatpush3.bf16.msra.mxu1 %v1123_v9 }
 0x33c   :  { %1055 = vmatprep.subr.bf16.mxu1 %v1324_v0 }
 0x33f   :  { %1056 = vmatpush3.bf16.msra.mxu1 %v1124_v10 }
 0x340   :  { %1057 = vmatprep.subr.bf16.mxu1 %v1324_v0 }
 0x343   :  { %1058 = vmatpush3.bf16.msra.mxu1 %v1125_v11 }
 0x344   :  { %1059 = vmatprep.subr.bf16.mxu1 %v1324_v0 }
 0x347   :  { %1060 = vmatpush3.bf16.msra.mxu1 %v1126_v12 }
 0x348   :  { %1061 = vmatprep.subr.bf16.mxu1 %v1324_v0 }
 0x34b   :  { %1062 = vmatpush3.bf16.msra.mxu1 %v1127_v22 }
 0x34c   :  { %1063 = vmatprep.subr.bf16.mxu1 %v1324_v0 }
 0x34f   :  { %1064 = vmatpush3.bf16.msra.mxu1 %v1128_v23 }
 0x405   :  { %v588_v14 = vpop.f32.mrb[4].mxu1 }
 0x406   :  { %v589_v15 = vadd.f32 %v868_v13, %v588_v14  ;;  %v1027_v16 = vpop.f32.mrb[5].mxu1 }
 0x407   :  { %v591_v17 = vpop.f32.mrb[6].mxu1 }
 0x408   :  { %v594_v18 = vmul.f32 0.1, %v589_v15  ;;  %v1028_v19 = vpop.f32.mrb[7].mxu1 }
 0x40a   :  { %v595_v20 = vmax.f32 %v589_v15, %v594_v18 }
 0x40c   :  { %v596_v21 = vpack.c.bf16 %v595_v20, %v595_v20 }
 0x40e   :  { %1046 = vmatmul.mubr.bf16.vlgmr.msra.gmra.mrb[8].mxu0 %v596_v21 }
 0x4e1   :  { %v702_v25 = vpop.f32.mrb[8].mxu0 }
 0x4e2   :  { %v703_v26 = vadd.f32 %v877_v24, %v702_v25  ;;  %v1047_v27 = vpop.f32.mrb[9].mxu0 }
 0x4e3   :  { %v705_v28 = vpop.f32.mrb[10].mxu0 }
 0x4e4   :  { %v708_v29 = vmul.f32 0.1, %v703_v26  ;;  %v1048_v30 = vpop.f32.mrb[11].mxu0 }
 0x4e6   :  { %v709_v31 = vmax.f32 %v703_v26, %v708_v29 }
 0x4e8   :  { %v710_v32 = vpack.c.bf16 %v709_v31, %v709_v31 }
 0x4ea   :  { %1066 = vmatmul.mubr.bf16.vlgmr.msra.gmra.mrb[8].mxu1 %v710_v32 }
 0x5bd   :  { %v816_v0 = vpop.f32.mrb[8].mxu1 }
 0x5be   :  { %v817_v34 = vadd.f32 %v886_v33, %v816_v0  ;;  %v1067_v35 = vpop.f32.mrb[9].mxu1 }
 0x5bf   :  { %v819_v36 = vpop.f32.mrb[10].mxu1 }
 0x5c0   :  { %822 = vst [vmem:[#allocation14] sm:$0xff] %v817_v34  ;;  %v1068_v37 = vpop.f32.mrb[11].mxu1 }
 0x5c1   :  { %1294 = shalt.err (!%p1291_p4)
}
 0x5c2   :  { %s1295_s12 = scalar_lea.hbm %s1602_s13, 128 }
 0x5c3   :  { %p1296_p5 = scmp.ne.s32.totalorder %s1602_s13, %s1295_s12  ;;  %p1299_p6 = scmp.lt.u32.totalorder %s1295_s12, %s1602_s13 }
 0x5c5   :  { %p1301_p7 = pnand %p1299_p6, %p1296_p5 }
 0x5c7   :  { %1304 = shalt.err (!%p1301_p7)
}
 0x5c8   :  { %832 = dma.vmem_to_hbm [thread:$0]  %s830_s30, 128, %s1602_s13, [#allocation4]  }
 0x5c9   :  { %1313 = dma.done.wait [#allocation4], 128  }
 0x5ca   :  { %1314 = vsyncadd [#allocation4], 4294967168 }
 0x5cb   :  { %836 = vsyncpa [#allocation3], 1 }
 0x5cc   :  { %837 = vsyncpa [#allocation6], 1 }
 0x5cd   :  { %838 = vsyncpa [#allocation9], 1 }
 0x5ce   :  { %839 = vsyncpa [#allocation12], 1 }
 0x5cf   :  { %840 = vsyncpa [#allocation4], 1 }

// kernel: tpu_custom_call.1
= control target key start
LH: loop header
LB: loop body
LE: loop exit
PB: predicated region body
PF: predicated region fallthrough
CT: control target
= control target key end

     0   :  { %18 = vsyncpa [#allocation3], 0  ;;  %s1589_s0 = inlined_call_operand.hbm [shape: f32[8,128], index: 0, kind: input, shape index: {}]   ;;  %s1590_s1 = inlined_call_operand.hbm [shape: bf16[128,128], index: 1, kind: input, shape index: {}]   ;;  %s1591_s2 = inlined_call_operand.vmem [shape: f32[1,128], index: 2, kind: input, shape index: {}]   ;;  %s1592_s3 = inlined_call_operand.hbm [shape: bf16[128,128], index: 3, kind: input, shape index: {}]   ;;  %s1593_s4 = inlined_call_operand.vmem [shape: f32[1,128], index: 4, kind: input, shape index: {}]   ;;  %s1594_s5 = inlined_call_operand.hbm [shape: bf16[128,128], index: 5, kind: input, shape index: {}]   ;;  %s1595_s6 = inlined_call_operand.vmem [shape: f32[1,128], index: 6, kind: input, shape index: {}]   ;;  %s1596_s7 = inlined_call_operand.hbm [shape: bf16[128,128], index: 7, kind: input, shape index: {}]   ;;  %s1597_s8 = inlined_call_operand.vmem [shape: f32[1,128], index: 8, kind: input, shape index: {}]   ;;  %s1598_s9 = inlined_call_operand.hbm [shape: bf16[128,128], index: 9, kind: input, shape index: {}]   ;;  %s1599_s10 = inlined_call_operand.vmem [shape: f32[1,128], index: 10, kind: input, shape index: {}]   ;;  %s1600_s11 = inlined_call_operand.hbm [shape: bf16[128,128], index: 11, kind: input, shape index: {}]   ;;  %s1601_s12 = inlined_call_operand.vmem [shape: f32[1,128], index: 12, kind: input, shape index: {}]   ;;  %s1602_s13 = inlined_call_operand.hbm [shape: f32[8,128], index: 13, kind: output, shape index: {}]  }
   0x1   :  { %19 = vsyncpa [#allocation6], 0 }
   0x2   :  { %20 = vsyncpa [#allocation9], 0 }
   0x3   :  { %21 = vsyncpa [#allocation12], 0 }
   0x4   :  { %22 = vsyncpa [#allocation4], 0  ;;  %s1315_s25 = smov [#allocation5]   ;;  %s1129_s29 = scalar_lea.hbm %s1590_s1, 1024 }
   0x5   :  { %s38_s26 = sshll.u32 %s1315_s25, 4  ;;  %p1130_p0 = scmp.ne.s32.totalorder %s1590_s1, %s1129_s29  ;;  %s39_s26 = int_to_ptr.vmem [resolvable:$true] %s38_s26 }
   0x6   :  { %p1133_p1 = scmp.lt.u32.totalorder %s1129_s29, %s1590_s1 }
   0x8   :  { %p1135_p2 = pnand %p1133_p1, %p1130_p0 }
   0xa   :  { %1138 = shalt.err (!%p1135_p2)
}
   0xb   :  { %s1139_s17 = scalar_lea.vmem %s39_s26, 1024  ;;  %p1144_p4 = scmp.lt.s32.totalorder %s39_s26, %s39_s26 }
   0xc   :  { %p1140_p3 = scmp.ne.s32.totalorder %s39_s26, %s1139_s17  ;;  %p1145_p5 = scmp.lt.s32.totalorder %s1139_s17, %s1139_s17 }
   0xe   :  { %p1146_p6 = por %p1145_p5, %p1144_p4 }
  0x10   :  { %p1147_p7 = pnand %p1146_p6, %p1140_p3 }
  0x12   :  { %1150 = shalt.err (!%p1147_p7)
}
  0x13   :  { %s1316_s18 = smov 64   ;;  %s1317_s19 = smov 4  }
  0x14   :  { %44 = dma.hbm_to_vmem [thread:$0]  %s1590_s1, 1024, %s39_s26, [#allocation6], %s1316_s18, %s1316_s18, %s1317_s19  }
  0x15   :  { %s1318_s22 = smov [#allocation8]   ;;  %s1319_s24 = smov [#allocation11]  }
  0x16   :  { %s66_s23 = sshll.u32 %s1318_s22, 4  ;;  %s94_s25 = sshll.u32 %s1319_s24, 4  ;;  %s67_s23 = int_to_ptr.vmem [resolvable:$true] %s66_s23  ;;  %s95_s25 = int_to_ptr.vmem [resolvable:$true] %s94_s25 }
  0x17   :  { %s1151_s29 = scalar_lea.hbm %s1594_s5, 1024 }
  0x18   :  { %p1152_p8 = scmp.ne.s32.totalorder %s1594_s5, %s1151_s29  ;;  %p1155_p9 = scmp.lt.u32.totalorder %s1151_s29, %s1594_s5 }
  0x1a   :  { %p1157_p10 = pnand %p1155_p9, %p1152_p8 }
  0x1c   :  { %1160 = shalt.err (!%p1157_p10)
}
  0x1d   :  { %s1161_s1 = scalar_lea.vmem %s67_s23, 1024  ;;  %p1166_p12 = scmp.lt.s32.totalorder %s67_s23, %s67_s23 }
  0x1e   :  { %p1162_p11 = scmp.ne.s32.totalorder %s67_s23, %s1161_s1  ;;  %p1167_p13 = scmp.lt.s32.totalorder %s1161_s1, %s1161_s1 }
  0x20   :  { %p1168_p0 = por %p1167_p13, %p1166_p12 }
  0x22   :  { %p1169_p1 = pnand %p1168_p0, %p1162_p11 }
  0x24   :  { %1172 = shalt.err (!%p1169_p1)
}
  0x25   :  { %72 = dma.hbm_to_vmem [thread:$0]  %s1594_s5, 1024, %s67_s23, [#allocation9], %s1316_s18, %s1316_s18, %s1317_s19  }
  0x26   :  { %s1173_s22 = scalar_lea.hbm %s1598_s9, 1024 }
  0x27   :  { %p1174_p2 = scmp.ne.s32.totalorder %s1598_s9, %s1173_s22  ;;  %p1177_p3 = scmp.lt.u32.totalorder %s1173_s22, %s1598_s9 }
  0x29   :  { %p1179_p4 = pnand %p1177_p3, %p1174_p2 }
  0x2b   :  { %1182 = shalt.err (!%p1179_p4)
}
  0x2c   :  { %s1183_s30 = scalar_lea.vmem %s95_s25, 1024  ;;  %p1188_p6 = scmp.lt.s32.totalorder %s95_s25, %s95_s25 }
  0x2d   :  { %p1184_p5 = scmp.ne.s32.totalorder %s95_s25, %s1183_s30  ;;  %p1189_p7 = scmp.lt.s32.totalorder %s1183_s30, %s1183_s30 }
  0x2f   :  { %p1190_p8 = por %p1189_p7, %p1188_p6 }
  0x31   :  { %p1191_p9 = pnand %p1190_p8, %p1184_p5 }
  0x33   :  { %1194 = shalt.err (!%p1191_p9)
}
  0x34   :  { %100 = dma.hbm_to_vmem [thread:$0]  %s1598_s9, 1024, %s95_s25, [#allocation12], %s1316_s18, %s1316_s18, %s1317_s19  }
  0x35   :  { %s1320_s14 = smov [#allocation2]   ;;  %s1321_s16 = smov [#allocation7]  }
  0x36   :  { %s29_s15 = sshll.u32 %s1320_s14, 4  ;;  %s52_s1 = sshll.u32 %s1321_s16, 4  ;;  %s30_s15 = int_to_ptr.vmem [resolvable:$true] %s29_s15  ;;  %s53_s1 = int_to_ptr.vmem [resolvable:$true] %s52_s1 }
  0x37   :  { %s1195_s20 = scalar_lea.hbm %s1589_s0, 128 }
  0x38   :  { %p1196_p10 = scmp.ne.s32.totalorder %s1589_s0, %s1195_s20  ;;  %p1199_p11 = scmp.lt.u32.totalorder %s1195_s20, %s1589_s0 }
  0x3a   :  { %p1201_p12 = pnand %p1199_p11, %p1196_p10 }
  0x3c   :  { %1204 = shalt.err (!%p1201_p12)
}
  0x3d   :  { %s1205_s9 = scalar_lea.vmem %s30_s15, 128  ;;  %p1210_p0 = scmp.lt.s32.totalorder %s30_s15, %s30_s15 }
  0x3e   :  { %p1206_p13 = scmp.ne.s32.totalorder %s30_s15, %s1205_s9  ;;  %p1211_p1 = scmp.lt.s32.totalorder %s1205_s9, %s1205_s9 }
  0x40   :  { %p1212_p2 = por %p1211_p1, %p1210_p0 }
  0x42   :  { %p1213_p3 = pnand %p1212_p2, %p1206_p13 }
  0x44   :  { %1216 = shalt.err (!%p1213_p3)
}
  0x45   :  { %32 = dma.hbm_to_vmem [thread:$0]  %s1589_s0, 128, %s30_s15, [#allocation3]  }
  0x46   :  { %s1217_s5 = scalar_lea.hbm %s1592_s3, 1024 }
  0x47   :  { %p1218_p4 = scmp.ne.s32.totalorder %s1592_s3, %s1217_s5  ;;  %p1221_p5 = scmp.lt.u32.totalorder %s1217_s5, %s1592_s3 }
  0x49   :  { %p1223_p6 = pnand %p1221_p5, %p1218_p4 }
  0x4b   :  { %1226 = shalt.err (!%p1223_p6)
}
  0x4c   :  { %s1227_s17 = scalar_lea.vmem %s53_s1, 1024  ;;  %p1232_p8 = scmp.lt.s32.totalorder %s53_s1, %s53_s1 }
  0x4d   :  { %p1228_p7 = scmp.ne.s32.totalorder %s53_s1, %s1227_s17  ;;  %p1233_p9 = scmp.lt.s32.totalorder %s1227_s17, %s1227_s17 }
  0x4f   :  { %p1234_p10 = por %p1233_p9, %p1232_p8 }
  0x51   :  { %p1235_p11 = pnand %p1234_p10, %p1228_p7 }
  0x53   :  { %1238 = shalt.err (!%p1235_p11)
}
  0x54   :  { %58 = dma.hbm_to_vmem [thread:$0]  %s1592_s3, 1024, %s53_s1, [#allocation6], %s1316_s18, %s1316_s18, %s1317_s19  }
  0x55   :  { %s1322_s20 = smov [#allocation10]   ;;  %s1323_s22 = smov [#allocation13]  }
  0x56   :  { %s80_s21 = sshll.u32 %s1322_s20, 4  ;;  %s108_s24 = sshll.u32 %s1323_s22, 4  ;;  %s81_s21 = int_to_ptr.vmem [resolvable:$true] %s80_s21  ;;  %s109_s24 = int_to_ptr.vmem [resolvable:$true] %s108_s24 }
  0x57   :  { %s1239_s25 = scalar_lea.hbm %s1596_s7, 1024 }
  0x58   :  { %p1240_p12 = scmp.ne.s32.totalorder %s1596_s7, %s1239_s25  ;;  %p1243_p13 = scmp.lt.u32.totalorder %s1239_s25, %s1596_s7 }
  0x5a   :  { %p1245_p0 = pnand %p1243_p13, %p1240_p12 }
  0x5c   :  { %1248 = shalt.err (!%p1245_p0)
}
  0x5d   :  { %s1249_s3 = scalar_lea.vmem %s81_s21, 1024  ;;  %p1254_p2 = scmp.lt.s32.totalorder %s81_s21, %s81_s21 }
  0x5e   :  { %p1250_p1 = scmp.ne.s32.totalorder %s81_s21, %s1249_s3  ;;  %p1255_p3 = scmp.lt.s32.totalorder %s1249_s3, %s1249_s3 }
  0x60   :  { %p1256_p4 = por %p1255_p3, %p1254_p2 }
  0x62   :  { %p1257_p5 = pnand %p1256_p4, %p1250_p1 }
  0x64   :  { %1260 = shalt.err (!%p1257_p5)
}
  0x65   :  { %86 = dma.hbm_to_vmem [thread:$0]  %s1596_s7, 1024, %s81_s21, [#allocation9], %s1316_s18, %s1316_s18, %s1317_s19  }
  0x66   :  { %s1261_s26 = scalar_lea.hbm %s1600_s11, 1024 }
  0x67   :  { %p1262_p6 = scmp.ne.s32.totalorder %s1600_s11, %s1261_s26  ;;  %p1265_p7 = scmp.lt.u32.totalorder %s1261_s26, %s1600_s11 }
  0x69   :  { %p1267_p8 = pnand %p1265_p7, %p1262_p6 }
  0x6b   :  { %1270 = shalt.err (!%p1267_p8)
}
  0x6c   :  { %s1271_s22 = scalar_lea.vmem %s109_s24, 1024  ;;  %p1276_p10 = scmp.lt.s32.totalorder %s109_s24, %s109_s24 }
  0x6d   :  { %p1272_p9 = scmp.ne.s32.totalorder %s109_s24, %s1271_s22  ;;  %p1277_p11 = scmp.lt.s32.totalorder %s1271_s22, %s1271_s22 }
  0x6f   :  { %p1278_p12 = por %p1277_p11, %p1276_p10 }
  0x71   :  { %p1279_p13 = pnand %p1278_p12, %p1272_p9 }
  0x73   :  { %1282 = shalt.err (!%p1279_p13)
}
  0x74   :  { %114 = dma.hbm_to_vmem [thread:$0]  %s1600_s11, 1024, %s109_s24, [#allocation12], %s1316_s18, %s1316_s18, %s1317_s19  }
  0x75   :  { %1305 = dma.done.wait [#allocation3], 128  }
  0x76   :  { %1306 = vsyncadd [#allocation3], 4294967168 }
  0x77   :  { %1307 = dma.done.wait [#allocation6], 2048  }
  0x78   :  { %1308 = vsyncadd [#allocation6], 4294965248 }
  0x79   :  { %1309 = dma.done.wait [#allocation9], 2048  }
  0x7a   :  { %1310 = vsyncadd [#allocation9], 4294965248 }
  0x7b   :  { %1311 = dma.done.wait [#allocation12], 2048  }
  0x7c   :  { %1312 = vsyncadd [#allocation12], 4294965248  ;;  %v1324_v0 = vmov 0.0   ;;  %vm1325_vm0 = vmmov 0   ;;  %v1081_v1 = vld [vmem:[#allocation5] sm:$0xff]   ;;  %v1082_v2 = vld [vmem:[#allocation5 + $0x8] sm:$0xff]  }
  0x7d   :  { %949 = vmatprep.subr.bf16.mxu0 %v1324_v0  ;;  %965 = vmatprep.mubr.msk.bf16.mxu0 %vm1325_vm0, %v1324_v0  ;;  %v1083_v3 = vld [vmem:[#allocation5 + $0x10] sm:$0xff]   ;;  %v1089_v4 = vld [vmem:[#allocation7] sm:$0xff]   ;;  %v1084_v5 = vld [vmem:[#allocation5 + $0x18] sm:$0xff]   ;;  %s1326_s29 = smov [#allocation14]  }
  0x7e   :  { %969 = vmatprep.subr.bf16.mxu1 %v1324_v0  ;;  %985 = vmatprep.mubr.msk.bf16.mxu1 %vm1325_vm0, %v1324_v0  ;;  %v1090_v6 = vld [vmem:[#allocation7 + $0x8] sm:$0xff]   ;;  %v1085_v7 = vld [vmem:[#allocation5 + $0x20] sm:$0xff]   ;;  %v1091_v8 = vld [vmem:[#allocation7 + $0x10] sm:$0xff]   ;;  %s829_s30 = sshll.u32 %s1326_s29, 4  ;;  %s830_s30 = int_to_ptr.vmem [resolvable:$true] %s829_s30 }
  0x7f   :  { %950 = vmatpush3.bf16.msra.mxu0 %v1081_v1  ;;  %970 = vmatpush3.bf16.msra.mxu1 %v1089_v4  ;;  %v1086_v9 = vld [vmem:[#allocation5 + $0x28] sm:$0xff]   ;;  %v1092_v10 = vld [vmem:[#allocation7 + $0x18] sm:$0xff]   ;;  %v1087_v11 = vld [vmem:[#allocation5 + $0x30] sm:$0xff]   ;;  %p1288_p1 = scmp.lt.s32.totalorder %s830_s30, %s830_s30 }
  0x80   :  { %951 = vmatprep.subr.bf16.mxu0 %v1324_v0  ;;  %971 = vmatprep.subr.bf16.mxu1 %v1324_v0  ;;  %v1093_v12 = vld [vmem:[#allocation7 + $0x20] sm:$0xff]   ;;  %v1088_v13 = vld [vmem:[#allocation5 + $0x38] sm:$0xff]   ;;  %v1094_v15 = vld [vmem:[#allocation7 + $0x28] sm:$0xff]  }
  0x81   :  { %v139_v14 = vld [vmem:[#allocation2] sm:$0xff]  ;;  %v1095_v17 = vld [vmem:[#allocation7 + $0x30] sm:$0xff]   ;;  %v1097_v19 = vld [vmem:[#allocation8] sm:$0xff]  }
  0x82   :  { %v140_v16 = vpack.c.bf16 %v139_v14, %v139_v14  ;;  %v1096_v18 = vld [vmem:[#allocation7 + $0x38] sm:$0xff]   ;;  %v1098_v20 = vld [vmem:[#allocation8 + $0x8] sm:$0xff]   ;;  %v1099_v21 = vld [vmem:[#allocation8 + $0x10] sm:$0xff]  }
  0x83   :  { %952 = vmatpush3.bf16.msra.mxu0 %v1082_v2  ;;  %972 = vmatpush3.bf16.msra.mxu1 %v1090_v6  ;;  %v1100_v22 = vld [vmem:[#allocation8 + $0x18] sm:$0xff]   ;;  %v1101_v23 = vld [vmem:[#allocation8 + $0x20] sm:$0xff]   ;;  %v1102_v24 = vld [vmem:[#allocation8 + $0x28] sm:$0xff]  }
  0x84   :  { %953 = vmatprep.subr.bf16.mxu0 %v1324_v0  ;;  %973 = vmatprep.subr.bf16.mxu1 %v1324_v0  ;;  %v841_v25 = vld [vmem:[%s1591_s2] ss:$0 sm:$0xff]  ;;  %v1103_v34 = vld [vmem:[#allocation8 + $0x30] sm:$0xff]   ;;  %v1105_v36 = vld [vmem:[#allocation10] sm:$0xff]  }
  0x85   :  { %v1104_v35 = vld [vmem:[#allocation8 + $0x38] sm:$0xff]   ;;  %v1106_v37 = vld [vmem:[#allocation10 + $0x8] sm:$0xff]   ;;  %v1107_v38 = vld [vmem:[#allocation10 + $0x10] sm:$0xff]  }
  0x86   :  { %v1108_v39 = vld [vmem:[#allocation10 + $0x18] sm:$0xff]   ;;  %v1109_v40 = vld [vmem:[#allocation10 + $0x20] sm:$0xff]   ;;  %v1110_v41 = vld [vmem:[#allocation10 + $0x28] sm:$0xff]  }
  0x87   :  { %954 = vmatpush3.bf16.msra.mxu0 %v1083_v3  ;;  %974 = vmatpush3.bf16.msra.mxu1 %v1091_v8  ;;  %v850_v42 = vld [vmem:[%s1593_s4] ss:$0 sm:$0xff]  ;;  %v1111_v51 = vld [vmem:[#allocation10 + $0x30] sm:$0xff]   ;;  %v1113_v53 = vld [vmem:[#allocation11] sm:$0xff]  }
  0x88   :  { %955 = vmatprep.subr.bf16.mxu0 %v1324_v0  ;;  %975 = vmatprep.subr.bf16.mxu1 %v1324_v0  ;;  %v1112_v52 = vld [vmem:[#allocation10 + $0x38] sm:$0xff]   ;;  %v1114_v54 = vld [vmem:[#allocation11 + $0x8] sm:$0xff]   ;;  %v1115_v55 = vld [vmem:[#allocation11 + $0x10] sm:$0xff]  }
  0x89   :  { %v1116_v56 = vld [vmem:[#allocation11 + $0x18] sm:$0xff]   ;;  %v1117_v57 = vld [vmem:[#allocation11 + $0x20] sm:$0xff]   ;;  %v1118_v58 = vld [vmem:[#allocation11 + $0x28] sm:$0xff]  }
  0x8a   :  { %v859_v59 = vld [vmem:[%s1595_s6] ss:$0 sm:$0xff]  ;;  %v1122_v8 = vld [vmem:[#allocation13 + $0x8] sm:$0xff]  }
  0x8b   :  { %956 = vmatpush3.bf16.msra.mxu0 %v1084_v5  ;;  %976 = vmatpush3.bf16.msra.mxu1 %v1092_v10  ;;  %v1119_v5 = vld [vmem:[#allocation11 + $0x30] sm:$0xff]   ;;  %v1120_v6 = vld [vmem:[#allocation11 + $0x38] sm:$0xff]  }
  0x8c   :  { %957 = vmatprep.subr.bf16.mxu0 %v1324_v0  ;;  %977 = vmatprep.subr.bf16.mxu1 %v1324_v0  ;;  %v1124_v10 = vld [vmem:[#allocation13 + $0x18] sm:$0xff]  }
  0x8f   :  { %958 = vmatpush3.bf16.msra.mxu0 %v1085_v7  ;;  %978 = vmatpush3.bf16.msra.mxu1 %v1093_v12  ;;  %v1121_v7 = vld [vmem:[#allocation13] sm:$0xff]   ;;  %v1126_v12 = vld [vmem:[#allocation13 + $0x28] sm:$0xff]  }
  0x90   :  { %959 = vmatprep.subr.bf16.mxu0 %v1324_v0  ;;  %979 = vmatprep.subr.bf16.mxu1 %v1324_v0 }
  0x93   :  { %960 = vmatpush3.bf16.msra.mxu0 %v1086_v9  ;;  %980 = vmatpush3.bf16.msra.mxu1 %v1094_v15  ;;  %v1123_v9 = vld [vmem:[#allocation13 + $0x10] sm:$0xff]  }
  0x94   :  { %961 = vmatprep.subr.bf16.mxu0 %v1324_v0  ;;  %981 = vmatprep.subr.bf16.mxu1 %v1324_v0 }
  0x97   :  { %962 = vmatpush3.bf16.msra.mxu0 %v1087_v11  ;;  %982 = vmatpush3.bf16.msra.mxu1 %v1095_v17  ;;  %v1125_v11 = vld [vmem:[#allocation13 + $0x20] sm:$0xff]  }
  0x98   :  { %963 = vmatprep.subr.bf16.mxu0 %v1324_v0  ;;  %983 = vmatprep.subr.bf16.mxu1 %v1324_v0 }
  0x9b   :  { %964 = vmatpush3.bf16.msra.mxu0 %v1088_v13  ;;  %984 = vmatpush3.bf16.msra.mxu1 %v1096_v18  ;;  %v868_v13 = vld [vmem:[%s1597_s8] ss:$0 sm:$0xff] }
  0x9c   :  { %989 = vmatprep.subr.bf16.mxu0 %v1324_v0  ;;  %1009 = vmatprep.subr.bf16.mxu1 %v1324_v0 }
  0x9e   :  { %966 = vmatmul.mubr.bf16.vlgmr.msra.gmra.mrb[0].mxu0 %v140_v16 }
  0x9f   :  { %1005 = vmatprep.mubr.msk.bf16.mxu0 %vm1325_vm0, %v1324_v0  ;;  %990 = vmatpush3.bf16.msra.mxu0 %v1097_v19 }
  0xa0   :  { %991 = vmatprep.subr.bf16.mxu0 %v1324_v0 }
  0xa3   :  { %992 = vmatpush3.bf16.msra.mxu0 %v1098_v20 }
  0xa4   :  { %993 = vmatprep.subr.bf16.mxu0 %v1324_v0 }
  0xa7   :  { %994 = vmatpush3.bf16.msra.mxu0 %v1099_v21 }
  0xa8   :  { %995 = vmatprep.subr.bf16.mxu0 %v1324_v0 }
  0xab   :  { %996 = vmatpush3.bf16.msra.mxu0 %v1100_v22  ;;  %v1127_v22 = vld [vmem:[#allocation13 + $0x30] sm:$0xff]  }
  0xac   :  { %997 = vmatprep.subr.bf16.mxu0 %v1324_v0 }
  0xaf   :  { %998 = vmatpush3.bf16.msra.mxu0 %v1101_v23  ;;  %v1128_v23 = vld [vmem:[#allocation13 + $0x38] sm:$0xff]  }
  0xb0   :  { %999 = vmatprep.subr.bf16.mxu0 %v1324_v0 }
  0xb3   :  { %1000 = vmatpush3.bf16.msra.mxu0 %v1102_v24  ;;  %v877_v24 = vld [vmem:[%s1599_s10] ss:$0 sm:$0xff]  ;;  %s1283_s10 = scalar_lea.vmem %s830_s30, 128 }
  0xb4   :  { %1001 = vmatprep.subr.bf16.mxu0 %v1324_v0  ;;  %p1284_p0 = scmp.ne.s32.totalorder %s830_s30, %s1283_s10  ;;  %p1289_p2 = scmp.lt.s32.totalorder %s1283_s10, %s1283_s10 }
  0xb6   :  { %p1290_p3 = por %p1289_p2, %p1288_p1 }
  0xb7   :  { %1002 = vmatpush3.bf16.msra.mxu0 %v1103_v34 }
  0xb8   :  { %1003 = vmatprep.subr.bf16.mxu0 %v1324_v0  ;;  %p1291_p4 = pnand %p1290_p3, %p1284_p0 }
  0xbb   :  { %1004 = vmatpush3.bf16.msra.mxu0 %v1104_v35 }
  0xbc   :  { %1029 = vmatprep.subr.bf16.mxu0 %v1324_v0 }
 0x171   :  { %v246_v26 = vpop.f32.mrb[0].mxu0 }
 0x172   :  { %v247_v27 = vadd.f32 %v841_v25, %v246_v26  ;;  %v967_v28 = vpop.f32.mrb[1].mxu0 }
 0x173   :  { %v249_v29 = vpop.f32.mrb[2].mxu0 }
 0x174   :  { %v252_v30 = vmul.f32 0.1, %v247_v27  ;;  %v968_v31 = vpop.f32.mrb[3].mxu0 }
 0x176   :  { %v253_v32 = vmax.f32 %v247_v27, %v252_v30 }
 0x178   :  { %v254_v33 = vpack.c.bf16 %v253_v32, %v253_v32 }
 0x17a   :  { %986 = vmatmul.mubr.bf16.vlgmr.msra.gmra.mrb[0].mxu1 %v254_v33  ;;  %v886_v33 = vld [vmem:[%s1601_s12] ss:$0 sm:$0xff] }
 0x17b   :  { %1025 = vmatprep.mubr.msk.bf16.mxu1 %vm1325_vm0, %v1324_v0  ;;  %1010 = vmatpush3.bf16.msra.mxu1 %v1105_v36 }
 0x17c   :  { %1011 = vmatprep.subr.bf16.mxu1 %v1324_v0 }
 0x17f   :  { %1012 = vmatpush3.bf16.msra.mxu1 %v1106_v37 }
 0x180   :  { %1013 = vmatprep.subr.bf16.mxu1 %v1324_v0 }
 0x183   :  { %1014 = vmatpush3.bf16.msra.mxu1 %v1107_v38 }
 0x184   :  { %1015 = vmatprep.subr.bf16.mxu1 %v1324_v0 }
 0x187   :  { %1016 = vmatpush3.bf16.msra.mxu1 %v1108_v39 }
 0x188   :  { %1017 = vmatprep.subr.bf16.mxu1 %v1324_v0 }
 0x18b   :  { %1018 = vmatpush3.bf16.msra.mxu1 %v1109_v40 }
 0x18c   :  { %1019 = vmatprep.subr.bf16.mxu1 %v1324_v0 }
 0x18f   :  { %1020 = vmatpush3.bf16.msra.mxu1 %v1110_v41 }
 0x190   :  { %1021 = vmatprep.subr.bf16.mxu1 %v1324_v0 }
 0x193   :  { %1022 = vmatpush3.bf16.msra.mxu1 %v1111_v51 }
 0x194   :  { %1023 = vmatprep.subr.bf16.mxu1 %v1324_v0 }
 0x197   :  { %1024 = vmatpush3.bf16.msra.mxu1 %v1112_v52 }
 0x198   :  { %1049 = vmatprep.subr.bf16.mxu1 %v1324_v0 }
 0x24d   :  { %v360_v43 = vpop.f32.mrb[0].mxu1 }
 0x24e   :  { %v361_v44 = vadd.f32 %v850_v42, %v360_v43  ;;  %v987_v45 = vpop.f32.mrb[1].mxu1 }
 0x24f   :  { %v363_v46 = vpop.f32.mrb[2].mxu1 }
 0x250   :  { %v366_v47 = vmul.f32 0.1, %v361_v44  ;;  %v988_v48 = vpop.f32.mrb[3].mxu1 }
 0x252   :  { %v367_v49 = vmax.f32 %v361_v44, %v366_v47 }
 0x254   :  { %v368_v50 = vpack.c.bf16 %v367_v49, %v367_v49 }
 0x256   :  { %1006 = vmatmul.mubr.bf16.vlgmr.msra.gmra.mrb[4].mxu0 %v368_v50 }
 0x257   :  { %1045 = vmatprep.mubr.msk.bf16.mxu0 %vm1325_vm0, %v1324_v0  ;;  %1030 = vmatpush3.bf16.msra.mxu0 %v1113_v53 }
 0x258   :  { %1031 = vmatprep.subr.bf16.mxu0 %v1324_v0 }
 0x25b   :  { %1032 = vmatpush3.bf16.msra.mxu0 %v1114_v54 }
 0x25c   :  { %1033 = vmatprep.subr.bf16.mxu0 %v1324_v0 }
 0x25f   :  { %1034 = vmatpush3.bf16.msra.mxu0 %v1115_v55 }
 0x260   :  { %1035 = vmatprep.subr.bf16.mxu0 %v1324_v0 }
 0x263   :  { %1036 = vmatpush3.bf16.msra.mxu0 %v1116_v56 }
 0x264   :  { %1037 = vmatprep.subr.bf16.mxu0 %v1324_v0 }
 0x267   :  { %1038 = vmatpush3.bf16.msra.mxu0 %v1117_v57 }
 0x268   :  { %1039 = vmatprep.subr.bf16.mxu0 %v1324_v0 }
 0x26b   :  { %1040 = vmatpush3.bf16.msra.mxu0 %v1118_v58 }
 0x26c   :  { %1041 = vmatprep.subr.bf16.mxu0 %v1324_v0 }
 0x26f   :  { %1042 = vmatpush3.bf16.msra.mxu0 %v1119_v5 }
 0x270   :  { %1043 = vmatprep.subr.bf16.mxu0 %v1324_v0 }
 0x273   :  { %1044 = vmatpush3.bf16.msra.mxu0 %v1120_v6 }
 0x329   :  { %v474_v60 = vpop.f32.mrb[4].mxu0 }
 0x32a   :  { %v475_v61 = vadd.f32 %v859_v59, %v474_v60  ;;  %v1007_v62 = vpop.f32.mrb[5].mxu0 }
 0x32b   :  { %v477_v63 = vpop.f32.mrb[6].mxu0 }
 0x32c   :  { %v480_v1 = vmul.f32 0.1, %v475_v61  ;;  %v1008_v2 = vpop.f32.mrb[7].mxu0 }
 0x32e   :  { %v481_v3 = vmax.f32 %v475_v61, %v480_v1 }
 0x330   :  { %v482_v4 = vpack.c.bf16 %v481_v3, %v481_v3 }
 0x332   :  { %1026 = vmatmul.mubr.bf16.vlgmr.msra.gmra.mrb[4].mxu1 %v482_v4 }
 0x333   :  { %1065 = vmatprep.mubr.msk.bf16.mxu1 %vm1325_vm0, %v1324_v0  ;;  %1050 = vmatpush3.bf16.msra.mxu1 %v1121_v7 }
 0x334   :  { %1051 = vmatprep.subr.bf16.mxu1 %v1324_v0 }
 0x337   :  { %1052 = vmatpush3.bf16.msra.mxu1 %v1122_v8 }
 0x338   :  { %1053 = vmatprep.subr.bf16.mxu1 %v1324_v0 }
 0x33b   :  { %1054 = vmatpush3.bf16.msra.mxu1 %v1123_v9 }
 0x33c   :  { %1055 = vmatprep.subr.bf16.mxu1 %v1324_v0 }
 0x33f   :  { %1056 = vmatpush3.bf16.msra.mxu1 %v1124_v10 }
 0x340   :  { %1057 = vmatprep.subr.bf16.mxu1 %v1324_v0 }
 0x343   :  { %1058 = vmatpush3.bf16.msra.mxu1 %v1125_v11 }
 0x344   :  { %1059 = vmatprep.subr.bf16.mxu1 %v1324_v0 }
 0x347   :  { %1060 = vmatpush3.bf16.msra.mxu1 %v1126_v12 }
 0x348   :  { %1061 = vmatprep.subr.bf16.mxu1 %v1324_v0 }
 0x34b   :  { %1062 = vmatpush3.bf16.msra.mxu1 %v1127_v22 }
 0x34c   :  { %1063 = vmatprep.subr.bf16.mxu1 %v1324_v0 }
 0x34f   :  { %1064 = vmatpush3.bf16.msra.mxu1 %v1128_v23 }
 0x405   :  { %v588_v14 = vpop.f32.mrb[4].mxu1 }
 0x406   :  { %v589_v15 = vadd.f32 %v868_v13, %v588_v14  ;;  %v1027_v16 = vpop.f32.mrb[5].mxu1 }
 0x407   :  { %v591_v17 = vpop.f32.mrb[6].mxu1 }
 0x408   :  { %v594_v18 = vmul.f32 0.1, %v589_v15  ;;  %v1028_v19 = vpop.f32.mrb[7].mxu1 }
 0x40a   :  { %v595_v20 = vmax.f32 %v589_v15, %v594_v18 }
 0x40c   :  { %v596_v21 = vpack.c.bf16 %v595_v20, %v595_v20 }
 0x40e   :  { %1046 = vmatmul.mubr.bf16.vlgmr.msra.gmra.mrb[8].mxu0 %v596_v21 }
 0x4e1   :  { %v702_v25 = vpop.f32.mrb[8].mxu0 }
 0x4e2   :  { %v703_v26 = vadd.f32 %v877_v24, %v702_v25  ;;  %v1047_v27 = vpop.f32.mrb[9].mxu0 }
 0x4e3   :  { %v705_v28 = vpop.f32.mrb[10].mxu0 }
 0x4e4   :  { %v708_v29 = vmul.f32 0.1, %v703_v26  ;;  %v1048_v30 = vpop.f32.mrb[11].mxu0 }
 0x4e6   :  { %v709_v31 = vmax.f32 %v703_v26, %v708_v29 }
 0x4e8   :  { %v710_v32 = vpack.c.bf16 %v709_v31, %v709_v31 }
 0x4ea   :  { %1066 = vmatmul.mubr.bf16.vlgmr.msra.gmra.mrb[8].mxu1 %v710_v32 }
 0x5bd   :  { %v816_v0 = vpop.f32.mrb[8].mxu1 }
 0x5be   :  { %v817_v34 = vadd.f32 %v886_v33, %v816_v0  ;;  %v1067_v35 = vpop.f32.mrb[9].mxu1 }
 0x5bf   :  { %v819_v36 = vpop.f32.mrb[10].mxu1 }
 0x5c0   :  { %822 = vst [vmem:[#allocation14] sm:$0xff] %v817_v34  ;;  %v1068_v37 = vpop.f32.mrb[11].mxu1 }
 0x5c1   :  { %1294 = shalt.err (!%p1291_p4)
}
 0x5c2   :  { %s1295_s12 = scalar_lea.hbm %s1602_s13, 128 }
 0x5c3   :  { %p1296_p5 = scmp.ne.s32.totalorder %s1602_s13, %s1295_s12  ;;  %p1299_p6 = scmp.lt.u32.totalorder %s1295_s12, %s1602_s13 }
 0x5c5   :  { %p1301_p7 = pnand %p1299_p6, %p1296_p5 }
 0x5c7   :  { %1304 = shalt.err (!%p1301_p7)
}
 0x5c8   :  { %832 = dma.vmem_to_hbm [thread:$0]  %s830_s30, 128, %s1602_s13, [#allocation4]  }
 0x5c9   :  { %1313 = dma.done.wait [#allocation4], 128  }
 0x5ca   :  { %1314 = vsyncadd [#allocation4], 4294967168 }
 0x5cb   :  { %836 = vsyncpa [#allocation3], 1 }
 0x5cc   :  { %837 = vsyncpa [#allocation6], 1 }
 0x5cd   :  { %838 = vsyncpa [#allocation9], 1 }
 0x5ce   :  { %839 = vsyncpa [#allocation12], 1 }
 0x5cf   :  { %840 = vsyncpa [#allocation4], 1 }

</bundles_post_ra>
